<compile_context>
chip_gen: v7x
topology: tpu7x:2x2x1
jax: 0.10.0
libtpu: 0.0.40
codegen_flags: <defaults>
</compile_context>

<pallas_src>
import math

import jax
import jax.numpy as jnp
from jax.experimental import pallas as pl
from jax.experimental.pallas import tpu as pltpu

EPS = 1e-6  # Norm eps (reference default)


# ----------------------------------------------------------------------------
# Fused encoder kernel: grid = (batch, layer). One grid step == one layer of
# one batch element. The residual stream lives in the resident output block.
# ----------------------------------------------------------------------------
def _make_fused_encoder_kernel(S, D, H):
    DK = D // H
    inv_sqrt_dk = 1.0 / math.sqrt(DK)

    def layer_norm(v, alpha, bias):
        # torch: alpha * (x - x.mean(-1)) / (x.std(-1, unbiased=True) + eps) + bias
        mu = jnp.mean(v, axis=-1, keepdims=True)
        var = jnp.sum((v - mu) ** 2, axis=-1, keepdims=True) * (1.0 / (D - 1))
        inv = pl.reciprocal(jnp.sqrt(var) + EPS, approx=True)   # EUP slot
        return alpha * (v - mu) * inv + bias

    def kernel(x_ref, mask_ref,
               a1_ref, g1_ref,
               wq_ref, bq_ref, wk_ref, bk_ref, wv_ref, bv_ref, wo_ref, bo_ref,
               a2_ref, g2_ref,
               w1_ref, c1_ref, w2_ref, c2_ref,
               na_ref, nb_ref,
               out_ref):
        l = pl.program_id(1)
        n_layers = pl.num_programs(1)

        # Initialize the resident residual stream from the embedding on layer 0.
        @pl.when(l == 0)
        def _():
            out_ref[...] = x_ref[...]

        x = out_ref[...]                                  # (S, D) f32 residual
        mask0 = (mask_ref[...] == 0)[None]                # (1, 1, S), True = masked key

        # ---------------- self-attention sublayer ----------------
        x2 = layer_norm(x, a1_ref[...], g1_ref[...]).astype(jnp.bfloat16)
        # linear weights are pre-transposed (in_features, out_features), bf16
        q = jnp.dot(x2, wq_ref[...], preferred_element_type=jnp.float32) + bq_ref[...]
        k = jnp.dot(x2, wk_ref[...], preferred_element_type=jnp.float32) + bk_ref[...]
        v = jnp.dot(x2, wv_ref[...], preferred_element_type=jnp.float32) + bv_ref[...]

        # Head split (h-major columns, matching torch .view(bs,-1,h,dk)):
        # (S, D) -> (H, S, DK) via static slices + stack; all heads batched after.
        def split_heads(t):
            return jnp.stack(
                [t[:, h * DK:(h + 1) * DK] for h in range(H)], axis=0
            ).astype(jnp.bfloat16)

        qh, kh, vh = split_heads(q), split_heads(k), split_heads(v)

        # Batched (over heads) MXU matmuls; scores/softmax stay in f32.
        sc = jnp.einsum("hqd,hkd->hqk", qh, kh,
                        preferred_element_type=jnp.float32) * inv_sqrt_dk
        sc = jnp.where(mask0, jnp.float32(-1e9), sc)             # masked_fill
        sc = sc - jnp.max(sc, axis=-1, keepdims=True)            # stable softmax
        p = jnp.exp(sc)
        p = p * pl.reciprocal(jnp.sum(p, axis=-1, keepdims=True), approx=True)

        ctx = jnp.einsum("hqk,hkd->hqd", p.astype(jnp.bfloat16), vh,
                         preferred_element_type=jnp.float32)      # (H, S, DK)
        concat = jnp.concatenate([ctx[h] for h in range(H)], axis=-1)  # (S, D)
        attn = jnp.dot(concat.astype(jnp.bfloat16), wo_ref[...],
                       preferred_element_type=jnp.float32) + bo_ref[...]
        x = x + attn                                              # dropout_1 = id

        # ---------------- feed-forward sublayer ----------------
        x2 = layer_norm(x, a2_ref[...], g2_ref[...]).astype(jnp.bfloat16)
        hid = jnp.dot(x2, w1_ref[...], preferred_element_type=jnp.float32) + c1_ref[...]
        hid = jnp.maximum(hid, 0.0).astype(jnp.bfloat16)          # ReLU
        ff = jnp.dot(hid, w2_ref[...], preferred_element_type=jnp.float32) + c2_ref[...]
        y = x + ff                                                # dropout_2 = id

        # Final Norm is fused into the last layer step.
        y_norm = layer_norm(y, na_ref[...], nb_ref[...])
        out_ref[...] = jnp.where(l == n_layers - 1, y_norm, y)

    return kernel


# ----------------------------------------------------------------------------
# Wrapper: embedding gather in plain JAX, then one fused pallas_call.
# ----------------------------------------------------------------------------
def encoder_forward(src, mask, params):
    # Embedder: gather is glue, done in plain JAX (not a matmul/reduction hot path).
    x = jnp.take(params["embed"], src, axis=0).astype(jnp.float32)   # (B, S, D)
    # NOTE: PositionalEncoder is not applied — matches the reference forward.
    B, S, D = x.shape
    layers = params["layers"]
    n_layers = len(layers)
    H = layers[0]["heads"]

    names = ["a1", "g1", "wq", "bq", "wk", "bk", "wv", "bv", "wo", "bo",
             "a2", "g2", "w1", "c1", "w2", "c2"]
    bf16_names = {"wq", "wk", "wv", "wo", "w1", "w2"}    # MXU operands in bf16

    stacked = []
    for nm in names:
        arr = jnp.stack([lp[nm] for lp in layers], axis=0)   # leading layer axis
        if nm in bf16_names:
            arr = arr.astype(jnp.bfloat16)
        stacked.append(arr)

    def per_layer_spec(arr):
        trailing = arr.shape[1:]
        n_trailing = len(trailing)
        return pl.BlockSpec((None,) + trailing,
                            lambda b, l, _n=n_trailing: (l,) + (0,) * _n)

    in_specs = (
        [pl.BlockSpec((None, S, D), lambda b, l: (b, 0, 0)),    # embedded x
         pl.BlockSpec((None, 1, S), lambda b, l: (b, 0, 0))]    # mask
        + [per_layer_spec(a) for a in stacked]                  # per-layer params
        + [pl.BlockSpec((1, D), lambda b, l: (0, 0)),           # final norm alpha
           pl.BlockSpec((1, D), lambda b, l: (0, 0))]           # final norm bias
    )

    kernel = _make_fused_encoder_kernel(S, D, H)

    return pl.pallas_call(
        kernel,
        out_shape=jax.ShapeDtypeStruct((B, S, D), jnp.float32),
        grid=(B, n_layers),
        in_specs=in_specs,
        out_specs=pl.BlockSpec((None, S, D), lambda b, l: (b, 0, 0)),
        compiler_params=pltpu.CompilerParams(
            dimension_semantics=("parallel", "arbitrary")),
    )(x, mask, *stacked, params["norm_a"], params["norm_b"])
    # TODO(synk): for large D (>=512) on v7x, tile d_ff / query rows and set
    # vmem_limit_bytes explicitly; at these sizes everything fits the default.


# ----------------------------------------------------------------------------
# Parameters (deterministic init; shapes follow the PyTorch module)
# ----------------------------------------------------------------------------
def init_params(key, vocab_size, d_model, N, heads, d_ff):
    def lin(k, fan_in, fan_out):
        kw, kb = jax.random.split(k)
        bound = 1.0 / math.sqrt(fan_in)
        # stored pre-transposed: (in_features, out_features) == W.T
        w_t = jax.random.uniform(kw, (fan_in, fan_out), jnp.float32, -bound, bound)
        b = jax.random.uniform(kb, (1, fan_out), jnp.float32, -bound, bound)
        return w_t, b

    keys = jax.random.split(key, N + 1)
    embed = jax.random.normal(keys[0], (vocab_size, d_model), jnp.float32)
    layers = []
    for i in range(N):
        ks = jax.random.split(keys[i + 1], 6)
        wq, bq = lin(ks[0], d_model, d_model)
        wk, bk = lin(ks[1], d_model, d_model)
        wv, bv = lin(ks[2], d_model, d_model)
        wo, bo = lin(ks[3], d_model, d_model)      # Wo.T, rows blocked per head
        w1, c1 = lin(ks[4], d_model, d_ff)
        w2, c2 = lin(ks[5], d_ff, d_model)
        layers.append(dict(
            heads=heads,
            a1=jnp.ones((1, d_model), jnp.float32), g1=jnp.zeros((1, d_model), jnp.float32),
            wq=wq, bq=bq, wk=wk, bk=bk, wv=wv, bv=bv, wo=wo, bo=bo,
            a2=jnp.ones((1, d_model), jnp.float32), g2=jnp.zeros((1, d_model), jnp.float32),
            w1=w1, c1=c1, w2=w2, c2=c2))
    return dict(embed=embed, layers=layers,
                norm_a=jnp.ones((1, d_model), jnp.float32),
                norm_b=jnp.zeros((1, d_model), jnp.float32))


if __name__ == "__main__":
    vocab_size, d_model, N, heads = 100, 32, 2, 4
    d_ff = 2048          # FeedForward default d_ff
    B, S = 2, 8

    key = jax.random.PRNGKey(0)
    k_par, k_src = jax.random.split(key)
    params = init_params(k_par, vocab_size, d_model, N, heads, d_ff)

    src = jax.random.randint(k_src, (B, S), 0, vocab_size, dtype=jnp.int32)
    mask = jnp.ones((B, 1, S), jnp.int32).at[:, :, -2:].set(0)   # mask last 2 keys

    out = encoder_forward(src, mask, params)
    out = jax.block_until_ready(out)
    assert out.shape == (B, S, d_model) and out.dtype == jnp.float32
    assert bool(jnp.all(jnp.isfinite(out)))
    print("KERNEL_OK")
</pallas_src>

<mosaic_0001>
module attributes {stable_mosaic.version = 11 : i64} {
  func.func @kernel(%arg0: i32, %arg1: i32, %arg2: memref<1x8x32xf32, #tpu.memory_space<vmem>>, %arg3: memref<1x1x8xi32, #tpu.memory_space<vmem>>, %arg4: memref<1x1x32xf32, #tpu.memory_space<vmem>>, %arg5: memref<1x1x32xf32, #tpu.memory_space<vmem>>, %arg6: memref<1x32x32xbf16, #tpu.memory_space<vmem>>, %arg7: memref<1x1x32xf32, #tpu.memory_space<vmem>>, %arg8: memref<1x32x32xbf16, #tpu.memory_space<vmem>>, %arg9: memref<1x1x32xf32, #tpu.memory_space<vmem>>, %arg10: memref<1x32x32xbf16, #tpu.memory_space<vmem>>, %arg11: memref<1x1x32xf32, #tpu.memory_space<vmem>>, %arg12: memref<1x32x32xbf16, #tpu.memory_space<vmem>>, %arg13: memref<1x1x32xf32, #tpu.memory_space<vmem>>, %arg14: memref<1x1x32xf32, #tpu.memory_space<vmem>>, %arg15: memref<1x1x32xf32, #tpu.memory_space<vmem>>, %arg16: memref<1x32x2048xbf16, #tpu.memory_space<vmem>>, %arg17: memref<1x1x2048xf32, #tpu.memory_space<vmem>>, %arg18: memref<1x2048x32xbf16, #tpu.memory_space<vmem>>, %arg19: memref<1x1x32xf32, #tpu.memory_space<vmem>>, %arg20: memref<1x32xf32, #tpu.memory_space<vmem>>, %arg21: memref<1x32xf32, #tpu.memory_space<vmem>>, %arg22: memref<1x8x32xf32, #tpu.memory_space<vmem>>) attributes {dimension_semantics = [#tpu.dimension_semantics<parallel>, #tpu.dimension_semantics<arbitrary>], iteration_bounds = array<i64: 2, 2>, scalar_prefetch = 0 : i64, scratch_operands = 0 : i64, tpu.core_type = #tpu.core_type<tc>, window_params = [{transform_indices = @transform_0, window_bounds = array<i64: 1, 8, 32>}, {transform_indices = @transform_1, window_bounds = array<i64: 1, 1, 8>}, {transform_indices = @transform_2, window_bounds = array<i64: 1, 1, 32>}, {transform_indices = @transform_3, window_bounds = array<i64: 1, 1, 32>}, {transform_indices = @transform_4, window_bounds = array<i64: 1, 32, 32>}, {transform_indices = @transform_5, window_bounds = array<i64: 1, 1, 32>}, {transform_indices = @transform_6, window_bounds = array<i64: 1, 32, 32>}, {transform_indices = @transform_7, window_bounds = array<i64: 1, 1, 32>}, {transform_indices = @transform_8, window_bounds = array<i64: 1, 32, 32>}, {transform_indices = @transform_9, window_bounds = array<i64: 1, 1, 32>}, {transform_indices = @transform_10, window_bounds = array<i64: 1, 32, 32>}, {transform_indices = @transform_11, window_bounds = array<i64: 1, 1, 32>}, {transform_indices = @transform_12, window_bounds = array<i64: 1, 1, 32>}, {transform_indices = @transform_13, window_bounds = array<i64: 1, 1, 32>}, {transform_indices = @transform_14, window_bounds = array<i64: 1, 32, 2048>}, {transform_indices = @transform_15, window_bounds = array<i64: 1, 1, 2048>}, {transform_indices = @transform_16, window_bounds = array<i64: 1, 2048, 32>}, {transform_indices = @transform_17, window_bounds = array<i64: 1, 1, 32>}, {pipeline_mode = #tpu.pipeline_mode<synchronous>, transform_indices = @transform_18, window_bounds = array<i64: 1, 32>}, {pipeline_mode = #tpu.pipeline_mode<synchronous>, transform_indices = @transform_19, window_bounds = array<i64: 1, 32>}, {transform_indices = @transform_20, window_bounds = array<i64: 1, 8, 32>}]} {
    %c0_i32 = arith.constant 0 : i32
    %0 = arith.cmpi eq, %arg1, %c0_i32 : i32
    %1 = arith.extui %0 : i1 to i32
    %c0_i32_0 = arith.constant 0 : i32
    %2 = arith.cmpi ne, %1, %c0_i32_0 : i32
    scf.if %2 {
      %c0_89 = arith.constant 0 : index
      %c0_90 = arith.constant 0 : index
      %c0_91 = arith.constant 0 : index
      %202 = vector.load %arg2[%c0_89, %c0_90, %c0_91] : memref<1x8x32xf32, #tpu.memory_space<vmem>>, vector<1x8x32xf32>
      %203 = vector.shape_cast %202 : vector<1x8x32xf32> to vector<8x32xf32>
      %c0_92 = arith.constant 0 : index
      %c0_93 = arith.constant 0 : index
      %c0_94 = arith.constant 0 : index
      %204 = vector.load %arg22[%c0_92, %c0_93, %c0_94] : memref<1x8x32xf32, #tpu.memory_space<vmem>>, vector<1x8x32xf32>
      %205 = vector.shape_cast %204 : vector<1x8x32xf32> to vector<8x32xf32>
      %206 = vector.shape_cast %203 : vector<8x32xf32> to vector<1x8x32xf32>
      tpu.vector_store %arg22[%c0_92, %c0_93, %c0_94], %206 {strides = array<i32>} : memref<1x8x32xf32, #tpu.memory_space<vmem>>, vector<1x8x32xf32>,
    } else {
    }
    %c0 = arith.constant 0 : index
    %c0_1 = arith.constant 0 : index
    %c0_2 = arith.constant 0 : index
    %3 = vector.load %arg22[%c0, %c0_1, %c0_2] : memref<1x8x32xf32, #tpu.memory_space<vmem>>, vector<1x8x32xf32>
    %4 = vector.shape_cast %3 : vector<1x8x32xf32> to vector<8x32xf32>
    %c0_3 = arith.constant 0 : index
    %c0_4 = arith.constant 0 : index
    %c0_5 = arith.constant 0 : index
    %5 = vector.load %arg3[%c0_3, %c0_4, %c0_5] : memref<1x1x8xi32, #tpu.memory_space<vmem>>, vector<1x1x8xi32>
    %6 = vector.shape_cast %5 : vector<1x1x8xi32> to vector<1x8xi32>
    %c0_i32_6 = arith.constant 0 : i32
    %7 = vector.broadcast %c0_i32_6 : i32 to vector<1x8xi32>
    %8 = arith.cmpi eq, %6, %7 : vector<1x8xi32>
    %9 = vector.shape_cast %8 : vector<1x8xi1> to vector<1x1x8xi1>
    %c0_7 = arith.constant 0 : index
    %c0_8 = arith.constant 0 : index
    %c0_9 = arith.constant 0 : index
    %10 = vector.load %arg4[%c0_7, %c0_8, %c0_9] : memref<1x1x32xf32, #tpu.memory_space<vmem>>, vector<1x1x32xf32>
    %11 = vector.shape_cast %10 : vector<1x1x32xf32> to vector<1x32xf32>
    %c0_10 = arith.constant 0 : index
    %c0_11 = arith.constant 0 : index
    %c0_12 = arith.constant 0 : index
    %12 = vector.load %arg5[%c0_10, %c0_11, %c0_12] : memref<1x1x32xf32, #tpu.memory_space<vmem>>, vector<1x1x32xf32>
    %13 = vector.shape_cast %12 : vector<1x1x32xf32> to vector<1x32xf32>
    %cst = arith.constant dense<0.000000e+00> : vector<8xf32>
    %14 = vector.multi_reduction <add>, %4, %cst [1] : vector<8x32xf32> to vector<8xf32>
    %15 = vector.shape_cast %14 : vector<8xf32> to vector<8x1xf32>
    %cst_13 = arith.constant 3.200000e+01 : f32
    %16 = vector.broadcast %cst_13 : f32 to vector<8x1xf32>
    %17 = arith.divf %15, %16 : vector<8x1xf32>
    %18 = vector.broadcast %17 : vector<8x1xf32> to vector<8x32xf32>
    %19 = arith.subf %4, %18 : vector<8x32xf32>
    %20 = arith.mulf %19, %19 : vector<8x32xf32>
    %cst_14 = arith.constant dense<0.000000e+00> : vector<8xf32>
    %21 = vector.multi_reduction <add>, %20, %cst_14 [1] : vector<8x32xf32> to vector<8xf32>
    %22 = vector.shape_cast %21 : vector<8xf32> to vector<8x1xf32>
    %cst_15 = arith.constant 0.0322580636 : f32
    %23 = vector.broadcast %cst_15 : f32 to vector<8x1xf32>
    %24 = arith.mulf %22, %23 : vector<8x1xf32>
    %25 = math.sqrt %24 : vector<8x1xf32>
    %cst_16 = arith.constant 9.99999997E-7 : f32
    %26 = vector.broadcast %cst_16 : f32 to vector<8x1xf32>
    %27 = arith.addf %25, %26 : vector<8x1xf32>
    %28 = tpu.reciprocal %27 {approx = true} : vector<8x1xf32> -> vector<8x1xf32>
    %29 = vector.broadcast %17 : vector<8x1xf32> to vector<8x32xf32>
    %30 = arith.subf %4, %29 : vector<8x32xf32>
    %31 = vector.broadcast %11 : vector<1x32xf32> to vector<8x32xf32>
    %32 = arith.mulf %31, %30 : vector<8x32xf32>
    %33 = vector.broadcast %28 : vector<8x1xf32> to vector<8x32xf32>
    %34 = arith.mulf %32, %33 : vector<8x32xf32>
    %35 = vector.broadcast %13 : vector<1x32xf32> to vector<8x32xf32>
    %36 = arith.addf %34, %35 : vector<8x32xf32>
    %37 = arith.truncf %36 : vector<8x32xf32> to vector<8x32xbf16>
    %c0_17 = arith.constant 0 : index
    %c0_18 = arith.constant 0 : index
    %c0_19 = arith.constant 0 : index
    %38 = vector.load %arg6[%c0_17, %c0_18, %c0_19] : memref<1x32x32xbf16, #tpu.memory_space<vmem>>, vector<1x32x32xbf16>
    %39 = vector.shape_cast %38 : vector<1x32x32xbf16> to vector<32x32xbf16>
    %cst_20 = arith.constant dense<0.000000e+00> : vector<8x32xf32>
    %40 = tpu.matmul %37, %39, %cst_20 {dimension_numbers = #tpu.dot_dimension_numbers<[1], [0], [0], [1], [0, 0, 1, 1], [], []>} : vector<8x32xbf16>, vector<32x32xbf16>, vector<8x32xf32> -> vector<8x32xf32>
    %c0_21 = arith.constant 0 : index
    %c0_22 = arith.constant 0 : index
    %c0_23 = arith.constant 0 : index
    %41 = vector.load %arg7[%c0_21, %c0_22, %c0_23] : memref<1x1x32xf32, #tpu.memory_space<vmem>>, vector<1x1x32xf32>
    %42 = vector.shape_cast %41 : vector<1x1x32xf32> to vector<1x32xf32>
    %43 = vector.broadcast %42 : vector<1x32xf32> to vector<8x32xf32>
    %44 = arith.addf %40, %43 : vector<8x32xf32>
    %c0_24 = arith.constant 0 : index
    %c0_25 = arith.constant 0 : index
    %c0_26 = arith.constant 0 : index
    %45 = vector.load %arg8[%c0_24, %c0_25, %c0_26] : memref<1x32x32xbf16, #tpu.memory_space<vmem>>, vector<1x32x32xbf16>
    %46 = vector.shape_cast %45 : vector<1x32x32xbf16> to vector<32x32xbf16>
    %cst_27 = arith.constant dense<0.000000e+00> : vector<8x32xf32>
    %47 = tpu.matmul %37, %46, %cst_27 {dimension_numbers = #tpu.dot_dimension_numbers<[1], [0], [0], [1], [0, 0, 1, 1], [], []>} : vector<8x32xbf16>, vector<32x32xbf16>, vector<8x32xf32> -> vector<8x32xf32>
    %c0_28 = arith.constant 0 : index
    %c0_29 = arith.constant 0 : index
    %c0_30 = arith.constant 0 : index
    %48 = vector.load %arg9[%c0_28, %c0_29, %c0_30] : memref<1x1x32xf32, #tpu.memory_space<vmem>>, vector<1x1x32xf32>
    %49 = vector.shape_cast %48 : vector<1x1x32xf32> to vector<1x32xf32>
    %50 = vector.broadcast %49 : vector<1x32xf32> to vector<8x32xf32>
    %51 = arith.addf %47, %50 : vector<8x32xf32>
    %c0_31 = arith.constant 0 : index
    %c0_32 = arith.constant 0 : index
    %c0_33 = arith.constant 0 : index
    %52 = vector.load %arg10[%c0_31, %c0_32, %c0_33] : memref<1x32x32xbf16, #tpu.memory_space<vmem>>, vector<1x32x32xbf16>
    %53 = vector.shape_cast %52 : vector<1x32x32xbf16> to vector<32x32xbf16>
    %cst_34 = arith.constant dense<0.000000e+00> : vector<8x32xf32>
    %54 = tpu.matmul %37, %53, %cst_34 {dimension_numbers = #tpu.dot_dimension_numbers<[1], [0], [0], [1], [0, 0, 1, 1], [], []>} : vector<8x32xbf16>, vector<32x32xbf16>, vector<8x32xf32> -> vector<8x32xf32>
    %c0_35 = arith.constant 0 : index
    %c0_36 = arith.constant 0 : index
    %c0_37 = arith.constant 0 : index
    %55 = vector.load %arg11[%c0_35, %c0_36, %c0_37] : memref<1x1x32xf32, #tpu.memory_space<vmem>>, vector<1x1x32xf32>
    %56 = vector.shape_cast %55 : vector<1x1x32xf32> to vector<1x32xf32>
    %57 = vector.broadcast %56 : vector<1x32xf32> to vector<8x32xf32>
    %58 = arith.addf %54, %57 : vector<8x32xf32>
    %59 = vector.extract_strided_slice %44 {offsets = [0, 0], sizes = [8, 8], strides = [1, 1]} : vector<8x32xf32> to vector<8x8xf32>
    %60 = vector.extract_strided_slice %44 {offsets = [0, 8], sizes = [8, 8], strides = [1, 1]} : vector<8x32xf32> to vector<8x8xf32>
    %61 = vector.extract_strided_slice %44 {offsets = [0, 16], sizes = [8, 8], strides = [1, 1]} : vector<8x32xf32> to vector<8x8xf32>
    %62 = vector.extract_strided_slice %44 {offsets = [0, 24], sizes = [8, 8], strides = [1, 1]} : vector<8x32xf32> to vector<8x8xf32>
    %63 = vector.shape_cast %59 : vector<8x8xf32> to vector<1x8x8xf32>
    %64 = vector.shape_cast %60 : vector<8x8xf32> to vector<1x8x8xf32>
    %65 = vector.shape_cast %61 : vector<8x8xf32> to vector<1x8x8xf32>
    %66 = vector.shape_cast %62 : vector<8x8xf32> to vector<1x8x8xf32>
    %67 = tpu.concatenate %63, %64, %65, %66 in 0 : vector<1x8x8xf32>, vector<1x8x8xf32>, vector<1x8x8xf32>, vector<1x8x8xf32> -> vector<4x8x8xf32>
    %68 = arith.truncf %67 : vector<4x8x8xf32> to vector<4x8x8xbf16>
    %69 = vector.extract_strided_slice %51 {offsets = [0, 0], sizes = [8, 8], strides = [1, 1]} : vector<8x32xf32> to vector<8x8xf32>
    %70 = vector.extract_strided_slice %51 {offsets = [0, 8], sizes = [8, 8], strides = [1, 1]} : vector<8x32xf32> to vector<8x8xf32>
    %71 = vector.extract_strided_slice %51 {offsets = [0, 16], sizes = [8, 8], strides = [1, 1]} : vector<8x32xf32> to vector<8x8xf32>
    %72 = vector.extract_strided_slice %51 {offsets = [0, 24], sizes = [8, 8], strides = [1, 1]} : vector<8x32xf32> to vector<8x8xf32>
    %73 = vector.shape_cast %69 : vector<8x8xf32> to vector<1x8x8xf32>
    %74 = vector.shape_cast %70 : vector<8x8xf32> to vector<1x8x8xf32>
    %75 = vector.shape_cast %71 : vector<8x8xf32> to vector<1x8x8xf32>
    %76 = vector.shape_cast %72 : vector<8x8xf32> to vector<1x8x8xf32>
    %77 = tpu.concatenate %73, %74, %75, %76 in 0 : vector<1x8x8xf32>, vector<1x8x8xf32>, vector<1x8x8xf32>, vector<1x8x8xf32> -> vector<4x8x8xf32>
    %78 = arith.truncf %77 : vector<4x8x8xf32> to vector<4x8x8xbf16>
    %79 = vector.extract_strided_slice %58 {offsets = [0, 0], sizes = [8, 8], strides = [1, 1]} : vector<8x32xf32> to vector<8x8xf32>
    %80 = vector.extract_strided_slice %58 {offsets = [0, 8], sizes = [8, 8], strides = [1, 1]} : vector<8x32xf32> to vector<8x8xf32>
    %81 = vector.extract_strided_slice %58 {offsets = [0, 16], sizes = [8, 8], strides = [1, 1]} : vector<8x32xf32> to vector<8x8xf32>
    %82 = vector.extract_strided_slice %58 {offsets = [0, 24], sizes = [8, 8], strides = [1, 1]} : vector<8x32xf32> to vector<8x8xf32>
    %83 = vector.shape_cast %79 : vector<8x8xf32> to vector<1x8x8xf32>
    %84 = vector.shape_cast %80 : vector<8x8xf32> to vector<1x8x8xf32>
    %85 = vector.shape_cast %81 : vector<8x8xf32> to vector<1x8x8xf32>
    %86 = vector.shape_cast %82 : vector<8x8xf32> to vector<1x8x8xf32>
    %87 = tpu.concatenate %83, %84, %85, %86 in 0 : vector<1x8x8xf32>, vector<1x8x8xf32>, vector<1x8x8xf32>, vector<1x8x8xf32> -> vector<4x8x8xf32>
    %88 = arith.truncf %87 : vector<4x8x8xf32> to vector<4x8x8xbf16>
    "tpu.trace_start"() <{level = 10 : i32, message = "hqd,hkd->hqk"}> : () -> ()
    %cst_38 = arith.constant dense<0.000000e+00> : vector<4x8x8xf32>
    %89 = tpu.matmul %68, %78, %cst_38 {dimension_numbers = #tpu.dot_dimension_numbers<[2], [2], [1], [1], [0, 0, 0, 1, 1, 1], [0], [0]>} : vector<4x8x8xbf16>, vector<4x8x8xbf16>, vector<4x8x8xf32> -> vector<4x8x8xf32>
    "tpu.trace_stop"() : () -> ()
    %cst_39 = arith.constant 0.353553385 : f32
    %90 = vector.broadcast %cst_39 : f32 to vector<4x8x8xf32>
    %91 = arith.mulf %89, %90 : vector<4x8x8xf32>
    %cst_40 = arith.constant -1.000000e+09 : f32
    %92 = vector.shape_cast %9 : vector<1x1x8xi1> to vector<1x1x8xi1>
    %93 = vector.broadcast %92 : vector<1x1x8xi1> to vector<4x8x8xi1>
    %94 = vector.broadcast %cst_40 : f32 to vector<4x8x8xf32>
    %95 = arith.select %93, %94, %91 : vector<4x8x8xi1>, vector<4x8x8xf32>
    %cst_41 = arith.constant dense<0xFF800000> : vector<4x8xf32>
    %96 = vector.multi_reduction <maximumf>, %95, %cst_41 [2] : vector<4x8x8xf32> to vector<4x8xf32>
    %97 = vector.shape_cast %96 : vector<4x8xf32> to vector<4x8x1xf32>
    %98 = vector.broadcast %97 : vector<4x8x1xf32> to vector<4x8x8xf32>
    %99 = arith.subf %95, %98 : vector<4x8x8xf32>
    %100 = math.exp %99 : vector<4x8x8xf32>
    %cst_42 = arith.constant dense<0.000000e+00> : vector<4x8xf32>
    %101 = vector.multi_reduction <add>, %100, %cst_42 [2] : vector<4x8x8xf32> to vector<4x8xf32>
    %102 = vector.shape_cast %101 : vector<4x8xf32> to vector<4x8x1xf32>
    %103 = tpu.reciprocal %102 {approx = true} : vector<4x8x1xf32> -> vector<4x8x1xf32>
    %104 = vector.broadcast %103 : vector<4x8x1xf32> to vector<4x8x8xf32>
    %105 = arith.mulf %100, %104 : vector<4x8x8xf32>
    %106 = arith.truncf %105 : vector<4x8x8xf32> to vector<4x8x8xbf16>
    "tpu.trace_start"() <{level = 10 : i32, message = "hqk,hkd->hqd"}> : () -> ()
    %cst_43 = arith.constant dense<0.000000e+00> : vector<4x8x8xf32>
    %107 = tpu.matmul %106, %88, %cst_43 {dimension_numbers = #tpu.dot_dimension_numbers<[2], [1], [1], [2], [0, 0, 0, 1, 1, 2], [0], [0]>} : vector<4x8x8xbf16>, vector<4x8x8xbf16>, vector<4x8x8xf32> -> vector<4x8x8xf32>
    "tpu.trace_stop"() : () -> ()
    %108 = vector.extract_strided_slice %107 {offsets = [0, 0, 0], sizes = [1, 8, 8], strides = [1, 1, 1]} : vector<4x8x8xf32> to vector<1x8x8xf32>
    %109 = vector.shape_cast %108 : vector<1x8x8xf32> to vector<8x8xf32>
    %110 = vector.extract_strided_slice %107 {offsets = [1, 0, 0], sizes = [1, 8, 8], strides = [1, 1, 1]} : vector<4x8x8xf32> to vector<1x8x8xf32>
    %111 = vector.shape_cast %110 : vector<1x8x8xf32> to vector<8x8xf32>
    %112 = vector.extract_strided_slice %107 {offsets = [2, 0, 0], sizes = [1, 8, 8], strides = [1, 1, 1]} : vector<4x8x8xf32> to vector<1x8x8xf32>
    %113 = vector.shape_cast %112 : vector<1x8x8xf32> to vector<8x8xf32>
    %114 = vector.extract_strided_slice %107 {offsets = [3, 0, 0], sizes = [1, 8, 8], strides = [1, 1, 1]} : vector<4x8x8xf32> to vector<1x8x8xf32>
    %115 = vector.shape_cast %114 : vector<1x8x8xf32> to vector<8x8xf32>
    %116 = tpu.concatenate %109, %111, %113, %115 in 1 : vector<8x8xf32>, vector<8x8xf32>, vector<8x8xf32>, vector<8x8xf32> -> vector<8x32xf32>
    %117 = arith.truncf %116 : vector<8x32xf32> to vector<8x32xbf16>
    %c0_44 = arith.constant 0 : index
    %c0_45 = arith.constant 0 : index
    %c0_46 = arith.constant 0 : index
    %118 = vector.load %arg12[%c0_44, %c0_45, %c0_46] : memref<1x32x32xbf16, #tpu.memory_space<vmem>>, vector<1x32x32xbf16>
    %119 = vector.shape_cast %118 : vector<1x32x32xbf16> to vector<32x32xbf16>
    %cst_47 = arith.constant dense<0.000000e+00> : vector<8x32xf32>
    %120 = tpu.matmul %117, %119, %cst_47 {dimension_numbers = #tpu.dot_dimension_numbers<[1], [0], [0], [1], [0, 0, 1, 1], [], []>} : vector<8x32xbf16>, vector<32x32xbf16>, vector<8x32xf32> -> vector<8x32xf32>
    %c0_48 = arith.constant 0 : index
    %c0_49 = arith.constant 0 : index
    %c0_50 = arith.constant 0 : index
    %121 = vector.load %arg13[%c0_48, %c0_49, %c0_50] : memref<1x1x32xf32, #tpu.memory_space<vmem>>, vector<1x1x32xf32>
    %122 = vector.shape_cast %121 : vector<1x1x32xf32> to vector<1x32xf32>
    %123 = vector.broadcast %122 : vector<1x32xf32> to vector<8x32xf32>
    %124 = arith.addf %120, %123 : vector<8x32xf32>
    %125 = arith.addf %4, %124 : vector<8x32xf32>
    %c0_51 = arith.constant 0 : index
    %c0_52 = arith.constant 0 : index
    %c0_53 = arith.constant 0 : index
    %126 = vector.load %arg14[%c0_51, %c0_52, %c0_53] : memref<1x1x32xf32, #tpu.memory_space<vmem>>, vector<1x1x32xf32>
    %127 = vector.shape_cast %126 : vector<1x1x32xf32> to vector<1x32xf32>
    %c0_54 = arith.constant 0 : index
    %c0_55 = arith.constant 0 : index
    %c0_56 = arith.constant 0 : index
    %128 = vector.load %arg15[%c0_54, %c0_55, %c0_56] : memref<1x1x32xf32, #tpu.memory_space<vmem>>, vector<1x1x32xf32>
    %129 = vector.shape_cast %128 : vector<1x1x32xf32> to vector<1x32xf32>
    %cst_57 = arith.constant dense<0.000000e+00> : vector<8xf32>
    %130 = vector.multi_reduction <add>, %125, %cst_57 [1] : vector<8x32xf32> to vector<8xf32>
    %131 = vector.shape_cast %130 : vector<8xf32> to vector<8x1xf32>
    %cst_58 = arith.constant 3.200000e+01 : f32
    %132 = vector.broadcast %cst_58 : f32 to vector<8x1xf32>
    %133 = arith.divf %131, %132 : vector<8x1xf32>
    %134 = vector.broadcast %133 : vector<8x1xf32> to vector<8x32xf32>
    %135 = arith.subf %125, %134 : vector<8x32xf32>
    %136 = arith.mulf %135, %135 : vector<8x32xf32>
    %cst_59 = arith.constant dense<0.000000e+00> : vector<8xf32>
    %137 = vector.multi_reduction <add>, %136, %cst_59 [1] : vector<8x32xf32> to vector<8xf32>
    %138 = vector.shape_cast %137 : vector<8xf32> to vector<8x1xf32>
    %cst_60 = arith.constant 0.0322580636 : f32
    %139 = vector.broadcast %cst_60 : f32 to vector<8x1xf32>
    %140 = arith.mulf %138, %139 : vector<8x1xf32>
    %141 = math.sqrt %140 : vector<8x1xf32>
    %cst_61 = arith.constant 9.99999997E-7 : f32
    %142 = vector.broadcast %cst_61 : f32 to vector<8x1xf32>
    %143 = arith.addf %141, %142 : vector<8x1xf32>
    %144 = tpu.reciprocal %143 {approx = true} : vector<8x1xf32> -> vector<8x1xf32>
    %145 = vector.broadcast %133 : vector<8x1xf32> to vector<8x32xf32>
    %146 = arith.subf %125, %145 : vector<8x32xf32>
    %147 = vector.broadcast %127 : vector<1x32xf32> to vector<8x32xf32>
    %148 = arith.mulf %147, %146 : vector<8x32xf32>
    %149 = vector.broadcast %144 : vector<8x1xf32> to vector<8x32xf32>
    %150 = arith.mulf %148, %149 : vector<8x32xf32>
    %151 = vector.broadcast %129 : vector<1x32xf32> to vector<8x32xf32>
    %152 = arith.addf %150, %151 : vector<8x32xf32>
    %153 = arith.truncf %152 : vector<8x32xf32> to vector<8x32xbf16>
    %c0_62 = arith.constant 0 : index
    %c0_63 = arith.constant 0 : index
    %c0_64 = arith.constant 0 : index
    %154 = vector.load %arg16[%c0_62, %c0_63, %c0_64] : memref<1x32x2048xbf16, #tpu.memory_space<vmem>>, vector<1x32x2048xbf16>
    %155 = vector.shape_cast %154 : vector<1x32x2048xbf16> to vector<32x2048xbf16>
    %cst_65 = arith.constant dense<0.000000e+00> : vector<8x2048xf32>
    %156 = tpu.matmul %153, %155, %cst_65 {dimension_numbers = #tpu.dot_dimension_numbers<[1], [0], [0], [1], [0, 0, 1, 1], [], []>} : vector<8x32xbf16>, vector<32x2048xbf16>, vector<8x2048xf32> -> vector<8x2048xf32>
    %c0_66 = arith.constant 0 : index
    %c0_67 = arith.constant 0 : index
    %c0_68 = arith.constant 0 : index
    %157 = vector.load %arg17[%c0_66, %c0_67, %c0_68] : memref<1x1x2048xf32, #tpu.memory_space<vmem>>, vector<1x1x2048xf32>
    %158 = vector.shape_cast %157 : vector<1x1x2048xf32> to vector<1x2048xf32>
    %159 = vector.broadcast %158 : vector<1x2048xf32> to vector<8x2048xf32>
    %160 = arith.addf %156, %159 : vector<8x2048xf32>
    %cst_69 = arith.constant 0.000000e+00 : f32
    %161 = vector.broadcast %cst_69 : f32 to vector<8x2048xf32>
    %162 = arith.maximumf %160, %161 : vector<8x2048xf32>
    %163 = arith.truncf %162 : vector<8x2048xf32> to vector<8x2048xbf16>
    %c0_70 = arith.constant 0 : index
    %c0_71 = arith.constant 0 : index
    %c0_72 = arith.constant 0 : index
    %164 = vector.load %arg18[%c0_70, %c0_71, %c0_72] : memref<1x2048x32xbf16, #tpu.memory_space<vmem>>, vector<1x2048x32xbf16>
    %165 = vector.shape_cast %164 : vector<1x2048x32xbf16> to vector<2048x32xbf16>
    %cst_73 = arith.constant dense<0.000000e+00> : vector<8x32xf32>
    %166 = tpu.matmul %163, %165, %cst_73 {dimension_numbers = #tpu.dot_dimension_numbers<[1], [0], [0], [1], [0, 0, 1, 1], [], []>} : vector<8x2048xbf16>, vector<2048x32xbf16>, vector<8x32xf32> -> vector<8x32xf32>
    %c0_74 = arith.constant 0 : index
    %c0_75 = arith.constant 0 : index
    %c0_76 = arith.constant 0 : index
    %167 = vector.load %arg19[%c0_74, %c0_75, %c0_76] : memref<1x1x32xf32, #tpu.memory_space<vmem>>, vector<1x1x32xf32>
    %168 = vector.shape_cast %167 : vector<1x1x32xf32> to vector<1x32xf32>
    %169 = vector.broadcast %168 : vector<1x32xf32> to vector<8x32xf32>
    %170 = arith.addf %166, %169 : vector<8x32xf32>
    %171 = arith.addf %125, %170 : vector<8x32xf32>
    %c0_77 = arith.constant 0 : index
    %c0_78 = arith.constant 0 : index
    %172 = vector.load %arg20[%c0_77, %c0_78] : memref<1x32xf32, #tpu.memory_space<vmem>>, vector<1x32xf32>
    %c0_79 = arith.constant 0 : index
    %c0_80 = arith.constant 0 : index
    %173 = vector.load %arg21[%c0_79, %c0_80] : memref<1x32xf32, #tpu.memory_space<vmem>>, vector<1x32xf32>
    %cst_81 = arith.constant dense<0.000000e+00> : vector<8xf32>
    %174 = vector.multi_reduction <add>, %171, %cst_81 [1] : vector<8x32xf32> to vector<8xf32>
    %175 = vector.shape_cast %174 : vector<8xf32> to vector<8x1xf32>
    %cst_82 = arith.constant 3.200000e+01 : f32
    %176 = vector.broadcast %cst_82 : f32 to vector<8x1xf32>
    %177 = arith.divf %175, %176 : vector<8x1xf32>
    %178 = vector.broadcast %177 : vector<8x1xf32> to vector<8x32xf32>
    %179 = arith.subf %171, %178 : vector<8x32xf32>
    %180 = arith.mulf %179, %179 : vector<8x32xf32>
    %cst_83 = arith.constant dense<0.000000e+00> : vector<8xf32>
    %181 = vector.multi_reduction <add>, %180, %cst_83 [1] : vector<8x32xf32> to vector<8xf32>
    %182 = vector.shape_cast %181 : vector<8xf32> to vector<8x1xf32>
    %cst_84 = arith.constant 0.0322580636 : f32
    %183 = vector.broadcast %cst_84 : f32 to vector<8x1xf32>
    %184 = arith.mulf %182, %183 : vector<8x1xf32>
    %185 = math.sqrt %184 : vector<8x1xf32>
    %cst_85 = arith.constant 9.99999997E-7 : f32
    %186 = vector.broadcast %cst_85 : f32 to vector<8x1xf32>
    %187 = arith.addf %185, %186 : vector<8x1xf32>
    %188 = tpu.reciprocal %187 {approx = true} : vector<8x1xf32> -> vector<8x1xf32>
    %189 = vector.broadcast %177 : vector<8x1xf32> to vector<8x32xf32>
    %190 = arith.subf %171, %189 : vector<8x32xf32>
    %191 = vector.broadcast %172 : vector<1x32xf32> to vector<8x32xf32>
    %192 = arith.mulf %191, %190 : vector<8x32xf32>
    %193 = vector.broadcast %188 : vector<8x1xf32> to vector<8x32xf32>
    %194 = arith.mulf %192, %193 : vector<8x32xf32>
    %195 = vector.broadcast %173 : vector<1x32xf32> to vector<8x32xf32>
    %196 = arith.addf %194, %195 : vector<8x32xf32>
    %c1_i32 = arith.constant 1 : i32
    %197 = arith.cmpi eq, %arg1, %c1_i32 : i32
    %198 = arith.select %197, %196, %171 : vector<8x32xf32>
    %c0_86 = arith.constant 0 : index
    %c0_87 = arith.constant 0 : index
    %c0_88 = arith.constant 0 : index
    %199 = vector.load %arg22[%c0_86, %c0_87, %c0_88] : memref<1x8x32xf32, #tpu.memory_space<vmem>>, vector<1x8x32xf32>
    %200 = vector.shape_cast %199 : vector<1x8x32xf32> to vector<8x32xf32>
    %201 = vector.shape_cast %198 : vector<8x32xf32> to vector<1x8x32xf32>
    tpu.vector_store %arg22[%c0_86, %c0_87, %c0_88], %201 {strides = array<i32>} : memref<1x8x32xf32, #tpu.memory_space<vmem>>, vector<1x8x32xf32>,
    return
  }
  func.func @transform_0(%arg0: i32, %arg1: i32) -> (i32, i32, i32) {
    %c0_i32 = arith.constant 0 : i32
    %c0_i32_0 = arith.constant 0 : i32
    %c0_i32_1 = arith.constant 0 : i32
    return %arg0, %c0_i32, %c0_i32_0 : i32, i32, i32
  }
  func.func @transform_1(%arg0: i32, %arg1: i32) -> (i32, i32, i32) {
    %c0_i32 = arith.constant 0 : i32
    %c0_i32_0 = arith.constant 0 : i32
    %c0_i32_1 = arith.constant 0 : i32
    return %arg0, %c0_i32, %c0_i32_0 : i32, i32, i32
  }
  func.func @transform_2(%arg0: i32, %arg1: i32) -> (i32, i32, i32) {
    %c0_i32 = arith.constant 0 : i32
    %c0_i32_0 = arith.constant 0 : i32
    %c0_i32_1 = arith.constant 0 : i32
    return %arg1, %c0_i32, %c0_i32_0 : i32, i32, i32
  }
  func.func @transform_3(%arg0: i32, %arg1: i32) -> (i32, i32, i32) {
    %c0_i32 = arith.constant 0 : i32
    %c0_i32_0 = arith.constant 0 : i32
    %c0_i32_1 = arith.constant 0 : i32
    return %arg1, %c0_i32, %c0_i32_0 : i32, i32, i32
  }
  func.func @transform_4(%arg0: i32, %arg1: i32) -> (i32, i32, i32) {
    %c0_i32 = arith.constant 0 : i32
    %c0_i32_0 = arith.constant 0 : i32
    %c0_i32_1 = arith.constant 0 : i32
    return %arg1, %c0_i32, %c0_i32_0 : i32, i32, i32
  }
  func.func @transform_5(%arg0: i32, %arg1: i32) -> (i32, i32, i32) {
    %c0_i32 = arith.constant 0 : i32
    %c0_i32_0 = arith.constant 0 : i32
    %c0_i32_1 = arith.constant 0 : i32
    return %arg1, %c0_i32, %c0_i32_0 : i32, i32, i32
  }
  func.func @transform_6(%arg0: i32, %arg1: i32) -> (i32, i32, i32) {
    %c0_i32 = arith.constant 0 : i32
    %c0_i32_0 = arith.constant 0 : i32
    %c0_i32_1 = arith.constant 0 : i32
    return %arg1, %c0_i32, %c0_i32_0 : i32, i32, i32
  }
  func.func @transform_7(%arg0: i32, %arg1: i32) -> (i32, i32, i32) {
    %c0_i32 = arith.constant 0 : i32
    %c0_i32_0 = arith.constant 0 : i32
    %c0_i32_1 = arith.constant 0 : i32
    return %arg1, %c0_i32, %c0_i32_0 : i32, i32, i32
  }
  func.func @transform_8(%arg0: i32, %arg1: i32) -> (i32, i32, i32) {
    %c0_i32 = arith.constant 0 : i32
    %c0_i32_0 = arith.constant 0 : i32
    %c0_i32_1 = arith.constant 0 : i32
    return %arg1, %c0_i32, %c0_i32_0 : i32, i32, i32
  }
  func.func @transform_9(%arg0: i32, %arg1: i32) -> (i32, i32, i32) {
    %c0_i32 = arith.constant 0 : i32
    %c0_i32_0 = arith.constant 0 : i32
    %c0_i32_1 = arith.constant 0 : i32
    return %arg1, %c0_i32, %c0_i32_0 : i32, i32, i32
  }
  func.func @transform_10(%arg0: i32, %arg1: i32) -> (i32, i32, i32) {
    %c0_i32 = arith.constant 0 : i32
    %c0_i32_0 = arith.constant 0 : i32
    %c0_i32_1 = arith.constant 0 : i32
    return %arg1, %c0_i32, %c0_i32_0 : i32, i32, i32
  }
  func.func @transform_11(%arg0: i32, %arg1: i32) -> (i32, i32, i32) {
    %c0_i32 = arith.constant 0 : i32
    %c0_i32_0 = arith.constant 0 : i32
    %c0_i32_1 = arith.constant 0 : i32
    return %arg1, %c0_i32, %c0_i32_0 : i32, i32, i32
  }
  func.func @transform_12(%arg0: i32, %arg1: i32) -> (i32, i32, i32) {
    %c0_i32 = arith.constant 0 : i32
    %c0_i32_0 = arith.constant 0 : i32
    %c0_i32_1 = arith.constant 0 : i32
    return %arg1, %c0_i32, %c0_i32_0 : i32, i32, i32
  }
  func.func @transform_13(%arg0: i32, %arg1: i32) -> (i32, i32, i32) {
    %c0_i32 = arith.constant 0 : i32
    %c0_i32_0 = arith.constant 0 : i32
    %c0_i32_1 = arith.constant 0 : i32
    return %arg1, %c0_i32, %c0_i32_0 : i32, i32, i32
  }
  func.func @transform_14(%arg0: i32, %arg1: i32) -> (i32, i32, i32) {
    %c0_i32 = arith.constant 0 : i32
    %c0_i32_0 = arith.constant 0 : i32
    %c0_i32_1 = arith.constant 0 : i32
    return %arg1, %c0_i32, %c0_i32_0 : i32, i32, i32
  }
  func.func @transform_15(%arg0: i32, %arg1: i32) -> (i32, i32, i32) {
    %c0_i32 = arith.constant 0 : i32
    %c0_i32_0 = arith.constant 0 : i32
    %c0_i32_1 = arith.constant 0 : i32
    return %arg1, %c0_i32, %c0_i32_0 : i32, i32, i32
  }
  func.func @transform_16(%arg0: i32, %arg1: i32) -> (i32, i32, i32) {
    %c0_i32 = arith.constant 0 : i32
    %c0_i32_0 = arith.constant 0 : i32
    %c0_i32_1 = arith.constant 0 : i32
    return %arg1, %c0_i32, %c0_i32_0 : i32, i32, i32
  }
  func.func @transform_17(%arg0: i32, %arg1: i32) -> (i32, i32, i32) {
    %c0_i32 = arith.constant 0 : i32
    %c0_i32_0 = arith.constant 0 : i32
    %c0_i32_1 = arith.constant 0 : i32
    return %arg1, %c0_i32, %c0_i32_0 : i32, i32, i32
  }
  func.func @transform_18(%arg0: i32, %arg1: i32) -> (i32, i32) {
    %c0_i32 = arith.constant 0 : i32
    %c0_i32_0 = arith.constant 0 : i32
    %c0_i32_1 = arith.constant 0 : i32
    return %c0_i32, %c0_i32_0 : i32, i32
  }
  func.func @transform_19(%arg0: i32, %arg1: i32) -> (i32, i32) {
    %c0_i32 = arith.constant 0 : i32
    %c0_i32_0 = arith.constant 0 : i32
    %c0_i32_1 = arith.constant 0 : i32
    return %c0_i32, %c0_i32_0 : i32, i32
  }
  func.func @transform_20(%arg0: i32, %arg1: i32) -> (i32, i32, i32) {
    %c0_i32 = arith.constant 0 : i32
    %c0_i32_0 = arith.constant 0 : i32
    %c0_i32_1 = arith.constant 0 : i32
    return %arg0, %c0_i32, %c0_i32_0 : i32, i32, i32
  }
}

</mosaic_0001>

<bundles_post_ra>
// kernel: tpu_custom_call.1
= control target key start
LH: loop header
LB: loop body
LE: loop exit
PB: predicated region body
PF: predicated region fallthrough
CT: control target
= control target key end

     0   :  { %s5687_s0 = inlined_call_operand.vmem [shape: f32[2,8,32], index: 0, kind: input, shape index: {}]   ;;  %s5688_s1 = inlined_call_operand.vmem [shape: s32[2,1,8], index: 1, kind: input, shape index: {}]   ;;  %s5689_s2 = inlined_call_operand.vmem [shape: f32[2,1,32], index: 2, kind: input, shape index: {}]   ;;  %s5690_s3 = inlined_call_operand.vmem [shape: f32[2,1,32], index: 3, kind: input, shape index: {}]   ;;  %s5691_s4 = inlined_call_operand.vmem [shape: bf16[2,32,32], index: 4, kind: input, shape index: {}]   ;;  %s5692_s5 = inlined_call_operand.vmem [shape: f32[2,1,32], index: 5, kind: input, shape index: {}]   ;;  %s5693_s6 = inlined_call_operand.vmem [shape: bf16[2,32,32], index: 6, kind: input, shape index: {}]   ;;  %s5694_s7 = inlined_call_operand.vmem [shape: f32[2,1,32], index: 7, kind: input, shape index: {}]   ;;  %s5695_s8 = inlined_call_operand.vmem [shape: bf16[2,32,32], index: 8, kind: input, shape index: {}]   ;;  %s5696_s9 = inlined_call_operand.vmem [shape: f32[2,1,32], index: 9, kind: input, shape index: {}]   ;;  %s5697_s10 = inlined_call_operand.vmem [shape: bf16[2,32,32], index: 10, kind: input, shape index: {}]   ;;  %s5698_s11 = inlined_call_operand.vmem [shape: f32[2,1,32], index: 11, kind: input, shape index: {}]   ;;  %s5699_s12 = inlined_call_operand.vmem [shape: f32[2,1,32], index: 12, kind: input, shape index: {}]   ;;  %s5700_s13 = inlined_call_operand.vmem [shape: f32[2,1,32], index: 13, kind: input, shape index: {}]   ;;  %s5701_s14 = inlined_call_operand.vmem [shape: bf16[2,32,2048], index: 14, kind: input, shape index: {}]   ;;  %s5702_s15 = inlined_call_operand.vmem [shape: f32[2,1,2048], index: 15, kind: input, shape index: {}]   ;;  %s5703_s16 = inlined_call_operand.vmem [shape: bf16[2,2048,32], index: 16, kind: input, shape index: {}]   ;;  %s5704_s17 = inlined_call_operand.vmem [shape: f32[2,1,32], index: 17, kind: input, shape index: {}]   ;;  %s5705_s18 = inlined_call_operand.vmem [shape: f32[1,32], index: 18, kind: input, shape index: {}]   ;;  %s5706_s19 = inlined_call_operand.vmem [shape: f32[1,32], index: 19, kind: input, shape index: {}]   ;;  %s5707_s20 = inlined_call_operand.hbm [shape: f32[2,8,32], index: 20, kind: output, shape index: {}]  }
   0x1   :  { %5725 = sst [smem:[#allocation20_spill]] %s5687_s0 }
   0x2   :  { %5726 = sst [smem:[#allocation21_spill]] %s5688_s1 }
   0x3   :  { %5727 = sst [smem:[#allocation22_spill]] %s5689_s2 }
   0x4   :  { %5728 = sst [smem:[#allocation23_spill]] %s5690_s3 }
   0x5   :  { %5729 = sst [smem:[#allocation24_spill]] %s5691_s4 }
   0x6   :  { %5730 = sst [smem:[#allocation25_spill]] %s5693_s6 }
   0x7   :  { %5731 = sst [smem:[#allocation26_spill]] %s5695_s8 }
   0x8   :  { %5732 = sst [smem:[#allocation27_spill]] %s5697_s10 }
   0x9   :  { %5733 = sst [smem:[#allocation28_spill]] %s5699_s12 }
   0xa   :  { %5734 = sst [smem:[#allocation29_spill]] %s5700_s13 }
   0xb   :  { %5735 = sst [smem:[#allocation30_spill]] %s5701_s14 }
   0xc   :  { %5736 = sst [smem:[#allocation31_spill]] %s5702_s15 }
   0xd   :  { %5737 = sst [smem:[#allocation32_spill]] %s5703_s16 }
   0xe   :  { %5738 = sst [smem:[#allocation33_spill]] %s5704_s17 }
   0xf   :  { %5739 = sst [smem:[#allocation34_spill]] %s5705_s18 }
  0x10   :  { %5740 = sst [smem:[#allocation35_spill]] %s5706_s19 }
  0x11   :  { %5741 = sst [smem:[#allocation36_spill]] %s5707_s20 }
  0x12   :  { %25 = vsyncpa [#allocation3], 0 }
  0x13   :  { %27 = vsyncpa [#allocation3 + $0x1], 0  ;;  %s5013_s1 = smov 0   ;;  %s5015_s22 = smov 0  }
  0x14   :  { %s5017_s23 = smov 0   ;;  %s5019_s24 = smov 0  }
  0x15   :  { %s5021_s2 = smov 0   ;;  %s5023_s25 = smov 0  }
  0x16   :  { %s5025_s3 = smov 0   ;;  %s5027_s26 = smov 0  }
  0x17 LB: > { %5742 = sst [smem:[#allocation5_spill]] %s4868_s1  ;;  %s4043_s27 = sadd.s32 4294967295, %s4896_s26   ;;  %s4896_s26 = sphi %s5027_s26, %s33_s26   ;;  %s4892_s3 = sphi %s5025_s3, %s5809_s3   ;;  %s4888_s25 = sphi %s5023_s25, %s5808_s25   ;;  %s4884_s2 = sphi %s5021_s2, %s5807_s2   ;;  %s4880_s24 = sphi %s5019_s24, %s5806_s24   ;;  %s4876_s23 = sphi %s5017_s23, %s5805_s23   ;;  %s4872_s22 = sphi %s5015_s22, %s5804_s22   ;;  %s4868_s1 = sphi %s5013_s1, %s5803_s1  }
  0x18   : > { %5743 = sst [smem:[#allocation6_spill]] %s4872_s22  ;;  %s4044_s28 = sadd.s32 4294967294, %s4896_s26  }
  0x19   : > { %5744 = sst [smem:[#allocation7_spill]] %s4876_s23  ;;  %s42_s4 = sadd.s32 1, %s4888_s25 }
  0x1a   : > { %5745 = sst [smem:[#allocation8_spill]] %s4880_s24  ;;  %p43_p0 = scmp.ge.s32.totalorder %s42_s4, 2 }
  0x1b   : > { %5746 = sst [smem:[#allocation9_spill]] %s4884_s2  ;;  %s45_s29 = sadd.s32 1, %s4892_s3 }
  0x1c   : > { %5747 = sst [smem:[#allocation10_spill]] %s4888_s25  ;;  %p572_p1 = scmp.ne.s32.totalorder %s4876_s23, %s4872_s22 }
  0x1d   : > { %5748 = sst [smem:[#allocation11_spill]] %s4892_s3  ;;  %p573_p2 = scmp.eq.s32.totalorder %s4043_s27, 3 }
  0x1e   : > { %5749 = sst [smem:[#allocation12_spill]] %s4896_s26  ;;  %s5811_s4 = smov (%p43_p0, %s42_s4), 0 }
  0x1f   : > { %5750 = sst [smem:[#allocation13_spill]] %s5811_s4  ;;  %s5813_s29 = smov (!%p43_p0, %s45_s29), %s4892_s3 }
  0x20   : > { %p5062_p3 = por %p573_p2, %p572_p1  ;;  %p578_p4 = scmp.ne.s32.totalorder %s4872_s22, %s4868_s1 }
  0x21   : > { %p47_p5 = scmp.ge.s32.totalorder %s5813_s29, 2  ;;  %p579_p6 = scmp.eq.s32.totalorder %s4044_s28, 3 }
  0x22   : > { %s5751_s30 = scalar_select %p5062_p3, 1, 0 }
  0x23   : > { %p4047_p7 = scmp.ge.s32.totalorder %s4896_s26, 1  ;;  %p725_p8 = scmp.lt.s32.totalorder %s4896_s26, 5 }
  0x24   : > { %5752 = sst [smem:[#allocation14_spill]] %s5751_s30  ;;  %s5815_s29 = smov (%p47_p5, %s5813_s29), 0 }
  0x25   : > { %5753 = sst [smem:[#allocation15_spill]] %s5815_s29  ;;  %p5072_p9 = por %p579_p6, %p578_p4 }
  0x26   : > { %p726_p10 = pnand %p4047_p7, %p725_p8  ;;  %s559_s21 = ssub.s32 %s4892_s3, %s5815_s29 }
  0x27   : > { %s5754_s0 = scalar_select %p5072_p9, 1, 0 }
  0x28   : > { %s562_s27 = sadd.s32 1, %s4876_s23  ;;  %p560_p11 = scmp.eq.s32.totalorder %s559_s21, 0 }
  0x29   : > { %5755 = sst [smem:[#allocation16_spill]] %s5754_s0  ;;  %729 = sbr.rel (%p726_p10) target bundleno = 3085 (0xc0d), region = 100 }
  0x2a   : > { %s5080_s4 = scalar_select %p560_p11, %s4876_s23, %s562_s27  }
  0x2c   : > { %5756 = sst [smem:[#allocation17_spill]] %s5080_s4 }
  0x30   : > { %s5712_s28 = sand.u32 1, %s4872_s22   ;;  %p846_p12 = scmp.lt.s32.totalorder %s4884_s2, 1 }
  0x31   : > { %s4048_s25 = sshll.u32 %s5712_s28, 3  ;;  %p853_p13 = scmp.lt.s32.totalorder %s4880_s24, 1 }
  0x32   : > { %s5088_s1 = scalar_select %p846_p12, %s4884_s2, 1 }
  0x33   : > { %s5091_s29 = scalar_select %p853_p13, %s4880_s24, 1 }
  0x34   : > { %5757 = sst [smem:[#allocation18_spill]] %s5088_s1  ;;  %s4049_s21 = sshll.u32 %s5088_s1, 3 }
  0x35   : > { %s5759_s26 = sld [smem:[#allocation20_spill]]  ;;  %s4267_s14 = sshll.u32 %s5091_s29, 4 }
  0x36   : > { %s5762_s12 = sld [smem:[#allocation24_spill]]  ;;  %s5763_s6 = sld [smem:[#allocation25_spill]] }
  0x37   : > { %s5764_s8 = sld [smem:[#allocation26_spill]]  ;;  %s5765_s10 = sld [smem:[#allocation27_spill]] }
  0x38   : > { %s5767_s17 = sld [smem:[#allocation28_spill]]  ;;  %s5771_s19 = sld [smem:[#allocation32_spill]] }
  0x39   : > { %s5772_s22 = sld [smem:[#allocation33_spill]] }
  0x3b   : > { %s849_s20 = scalar_lea.vmem %s5759_s26, %s4049_s21  ;;  %s5769_s21 = sld [smem:[#allocation31_spill]] }
  0x3c   : > { %s5113_s3 = scalar_lea.vmem %s5762_s12, %s4267_s14  ;;  %s5122_s18 = scalar_lea.vmem %s5763_s6, %s4267_s14 }
  0x3d   : > { %s5131_s13 = scalar_lea.vmem %s5764_s8, %s4267_s14  ;;  %s5140_s4 = scalar_lea.vmem %s5765_s10, %s4267_s14 }
  0x3e   : > { %5766 = sst [smem:[#allocation19_spill]] %s5140_s4  ;;  %s893_s16 = scalar_lea.vmem %s5767_s17, %s5091_s29 }
  0x3f   : > { %s4271_s8 = sshll.u32 %s5091_s29, 8  ;;  %s5770_s10 = sld [smem:[#allocation30_spill]] }
  0x40   : > { %s4272_s26 = sshll.u32 %s5091_s29, 10  ;;  %s913_s30 = scalar_lea.vmem %s5772_s22, %s5091_s29 }
  0x41   : > { %s5158_s1 = scalar_lea.vmem %s5769_s21, %s4267_s14  ;;  %s5169_s17 = scalar_lea.vmem %s5771_s19, %s4272_s26 }
  0x42   : > { %s5175_s6 = scalar_lea.vmem [#allocation2], %s4048_s25  ;;  %s5773_s12 = sld [smem:[#allocation8_spill]] }
  0x45   : > { %s5163_s4 = scalar_lea.vmem %s5770_s10, %s4271_s8 }
  0x48   : > { %p4063_p0 = scmp.ne.s32.totalorder %s5773_s12, 0 }
  0x49   : > { %v919_v0 = vld [vmem:[%s849_s20] sm:$0xff] (!%p4063_p0)  ;;  %vm920_vm0 = vcmask (!%p4063_p0), 261120  }
  0x4a   : > { %918 = sbr.rel (%p4063_p0) target bundleno = 81 (0x51), region = 104  ;;  %921 = vst.msk [vmem:[%s5175_s6] sm:$0xff] (!%p4063_p0), %vm920_vm0, %v919_v0 }
  0x51 PF: > { %v922_v1 = vld [vmem:[%s5175_s6] sm:$0xff]  ;;  %vm927_vm1 = vcmask 261120   ;;  %v4898_v10 = vmov 0.0   ;;  %vm4899_vm2 = vmmov 0   ;;  %s5774_s14 = sld [smem:[#allocation22_spill]]  ;;  %s5776_s23 = sld [smem:[#allocation23_spill]] }
  0x52   : > { %v928_v2 = vsel %vm927_vm1, %v922_v1, 0.0  ;;  %v4637_v8 = vld [vmem:[%s5113_s3] sm:$0xff]   ;;  %4477 = vmatprep.subr.bf16.mxu0 %v4898_v10  ;;  %4485 = vmatprep.subr.bf16.mxu1 %v4898_v10  ;;  %v4639_v11 = vld [vmem:[%s5113_s3 + $0x8] sm:$0xff]   ;;  %s5779_s26 = scalar_lea.vmem %s5694_s7, %s5091_s29  ;;  %vm1198_vm5 = vcmask 64512   ;;  %s4900_s0 = smov 120   ;;  %vm1448_vm6 = vcmask 1043456  }
  0x53   : > { %929 = vadd.xlane.f32.xlu0 %v928_v2  ;;  %v4638_v9 = vld [vmem:[%s5122_s18] sm:$0xff]   ;;  %4478 = vmatpush3.bf16.msra.mxu0 %v4637_v8  ;;  %v4640_v12 = vld [vmem:[%s5122_s18 + $0x8] sm:$0xff]   ;;  %s4901_s19 = smov 112   ;;  %s4902_s24 = smov 104   ;;  %v4903_v8 = vmov 0   ;;  %vm1643_vm9 = vcmask 130048  }
  0x54   : > { %4486 = vmatpush3.bf16.msra.mxu1 %v4638_v9  ;;  %4479 = vmatprep.subr.bf16.mxu0 %v4898_v10  ;;  %v4641_v27 = vld [vmem:[%s5131_s13] sm:$0xff]   ;;  %v4642_v29 = vld [vmem:[%s5131_s13 + $0x8] sm:$0xff]   ;;  %s5778_s13 = scalar_lea.vmem %s5692_s5, %s5091_s29  ;;  %s5780_s12 = scalar_lea.vmem %s5696_s9, %s5091_s29  ;;  %vm1645_vm10 = vcmask 195584  }
  0x55   : > { %4487 = vmatprep.subr.bf16.mxu1 %v4898_v10  ;;  %4481 = vmatprep.mubr.msk.bf16.mxu0 %vm4899_vm2, %v4898_v10  ;;  %v4066_v30 = vld [vmem:[%s5778_s13] ss:$0 sm:$0xff]  ;;  %s5781_s8 = sld [smem:[#allocation18_spill]]  ;;  %s5786_s3 = sld [smem:[#allocation19_spill]] }
  0x56   : > { %4489 = vmatprep.mubr.msk.bf16.mxu1 %vm4899_vm2, %v4898_v10  ;;  %v4070_v31 = vld [vmem:[%s5779_s26] ss:$0 sm:$0xff]  ;;  %s4906_s21 = smov 24   ;;  %s5787_s28 = scalar_lea.vmem %s5698_s11, %s5091_s29 }
  0x57   : > { %4480 = vmatpush3.bf16.msra.mxu0 %v4639_v11  ;;  %s5775_s20 = scalar_lea.vmem %s5774_s14, %s5091_s29  ;;  %s5777_s18 = scalar_lea.vmem %s5776_s23, %s5091_s29  ;;  %v4074_v52 = vld [vmem:[%s5780_s12] ss:$0 sm:$0xff] }
  0x58   : > { %4488 = vmatpush3.bf16.msra.mxu1 %v4640_v12  ;;  %4493 = vmatprep.subr.bf16.mxu0 %v4898_v10  ;;  %v4064_v21 = vld [vmem:[%s5775_s20] ss:$0 sm:$0xff]  ;;  %s5782_s20 = sld [smem:[#allocation21_spill]]  ;;  %s4904_s23 = smov 8  }
  0x59   : > { %4501 = vmatprep.subr.bf16.mxu1 %v4898_v10  ;;  %v4065_v24 = vld [vmem:[%s5777_s18] ss:$0 sm:$0xff]  ;;  %s4905_s18 = smov 16   ;;  %s5789_s2 = sld [smem:[#allocation29_spill]] }
  0x5a   : > { %s5795_s14 = sld [smem:[#allocation34_spill]] }
  0x5e   : > { %s5783_s25 = scalar_lea.vmem %s5782_s20, %s5781_s8 }
  0x5f   : > { %s5790_s22 = scalar_lea.vmem %s5789_s2, %s5091_s29  ;;  %s5792_s29 = sld [smem:[#allocation8_spill]] }
  0x65   : > { %p3779_p1 = scmp.eq.s32.totalorder %s5792_s29, 1 }
  0x67   : > { %s3780_s12 = scalar_select %p3779_p1, 1, 0 }
  0xe0   : > { %v930_v3 = vpop.xlane.xlu0 %929 }
  0xe1   : > { %v932_v4 = vmul.f32 0.03125, %v930_v3 }
  0xe3   : > { %v933_v5 = vsub.f32 %v922_v1, %v932_v4  ;;  %v1388_v4 = vlaneseq }
  0xe5   : > { %v934_v6 = vmul.f32 %v933_v5, %v933_v5  ;;  %v954_v22 = vmul.f32 %v4064_v21, %v933_v5  ;;  %v923_v5 = vld [vmem:[%s5783_s25] sm:$0x1] }
  0xe6   : > { %vm924_vm7 = vcmp.eq.s32.totalorder %v923_v5, 0 }
  0xe7   : > { %v935_v7 = vsel %vm927_vm1, %v934_v6, 0.0  ;;  %v5271_v6 = vshrl.u32 %v1388_v4, 7  ;;  %v1387_v9 = vsel %vm924_vm7, 1, %v4903_v8 }
  0xe8   : > { %936 = vadd.xlane.f32.xlu0 %v935_v7 }
  0xe9   : > { %v5274_v7 = vsub.s32 0, %v5271_v6 }
  0xeb   : > { %v1391_v11 = vrot.slane %v1387_v9, %v5274_v7 }
  0xed   : > { %vm5278_vm8 = vcmp.eq.s32.totalorder %v1391_v11, 1 }
 0x175   : > { %v937_v13 = vpop.xlane.xlu0 %936 }
 0x176   : > { %v938_v14 = vmul.f32 0.032258064, %v937_v13 }
 0x178   : > { %4773 = vrsqrt.f32 %v938_v14  ;;  %vm941_vm3 = vcmp.eq.f32.partialorder %v938_v14, inf  ;;  %v944_v17 = vand.u32 2147483648, %v938_v14  ;;  %vm943_vm4 = vcmp.eq.f32.partialorder %v938_v14, 0.0 }
 0x182   : > { %v4774_v15 = vpop.eup %4773 }
 0x183   : > { %v940_v16 = vmul.f32 %v4774_v15, %v938_v14 }
 0x185   : > { %v942_v18 = vsel %vm941_vm3, %v938_v14, %v940_v16 }
 0x186   : > { %v945_v19 = vsel %vm943_vm4, %v944_v17, %v942_v18 }
 0x187   : > { %v946_v20 = vadd.f32 1e-06, %v945_v19 }
 0x189   : > { %4775 = vrcp.f32 %v946_v20 }
 0x193   : > { %v4776_v23 = vpop.eup %4775 }
 0x194   : > { %v955_v25 = vmul.f32 %v4776_v23, %v954_v22 }
 0x196   : > { %v962_v26 = vadd.f32 %v4065_v24, %v955_v25 }
 0x198   : > { %v963_v28 = vpack.c.bf16 %v962_v26, %v962_v26 }
 0x19a   : > { %4482 = vmatmul.mubr.msk.bf16.vlgmr.msra.gmra.mrb[0].mxu0 %vm927_vm1, %v963_v28  ;;  %4490 = vmatmul.mubr.msk.bf16.vlgmr.msra.gmra.mrb[0].mxu1 %vm927_vm1, %v963_v28 }
 0x19b   : > { %4494 = vmatpush3.bf16.msra.mxu0 %v4641_v27  ;;  %4497 = vmatprep.mubr.msk.bf16.mxu0 %vm4899_vm2, %v4898_v10 }
 0x19c   : > { %4495 = vmatprep.subr.bf16.mxu0 %v4898_v10  ;;  %4503 = vmatprep.mubr.msk.bf16.mxu1 %vm4899_vm2, %v4898_v10 }
 0x19f   : > { %4496 = vmatpush3.bf16.msra.mxu0 %v4642_v29 }
 0x1a0   : > { %4507 = vmatprep.subr.bf16.mxu0 %v4898_v10 }
 0x1a2   : > { %4498 = vmatmul.mubr.msk.bf16.vlgmr.msra.gmra.mrb[4].mxu0 %vm927_vm1, %v963_v28 }
 0x1a3   : > { %4509 = vmatprep.mubr.msk.bf16.mxu0 %vm4899_vm2, %v4898_v10 }
 0x26d   : > { %v1024_v32 = vpop.f32.mrb[0].mxu0  ;;  %v1087_v33 = vpop.f32.mrb[0].mxu1 }
 0x26e   : > { %v1025_v34 = vadd.f32 %v4066_v30, %v1024_v32  ;;  %v1088_v35 = vadd.f32 %v4070_v31, %v1087_v33  ;;  %v4483_v36 = vpop.f32.mrb[1].mxu0  ;;  %v4491_v37 = vpop.f32.mrb[1].mxu1 }
 0x26f   : > { %v1027_v38 = vpop.f32.mrb[2].mxu0  ;;  %v1090_v39 = vpop.f32.mrb[2].mxu1 }
 0x270   : > { %1171 = vrot.lane.b32.xlu1 %v1088_v35, %s4900_s0  ;;  %v4492_v40 = vpop.f32.mrb[3].mxu1  ;;  %1157 = vrot.lane.b32.xlu0 %v1025_v34, %s4900_s0  ;;  %v4484_v41 = vpop.f32.mrb[3].mxu0  ;;  %v1180_v42 = vpack.c.bf16 %v1088_v35, %v1088_v35  ;;  %v1166_v47 = vpack.c.bf16 %v1025_v34, %v1025_v34 }
 0x272   : > { %v1203_v43 = vsel %vm1198_vm5, %v1180_v42, 0 }
 0x273   : > { %4502 = vmatpush3.bf16.xpose.msra.mxu1 %v1203_v43 }
 0x274   : > { %1174 = vrot.lane.b32.xlu1 %v1088_v35, %s4901_s19  ;;  %4513 = vmatprep.subr.bf16.mxu1 %v4898_v10 }
 0x275   : > { %v1150_v44 = vpop.f32.mrb[4].mxu0 }
 0x276   : > { %v4499_v45 = vpop.f32.mrb[5].mxu0  ;;  %v5247_v56 = vadd.f32 %v4074_v52, %v1150_v44 }
 0x277   : > { %v1153_v46 = vpop.f32.mrb[6].mxu0 }
 0x278   : > { %1177 = vrot.lane.b32.xlu1 %v1088_v35, %s4902_s24  ;;  %v4500_v48 = vpop.f32.mrb[7].mxu0  ;;  %v1194_v62 = vpack.c.bf16 %v5247_v56, %v5247_v56 }
 0x27a   : > { %4504 = vmatmul.mubr.msk.bf16.vlgmr.msra.gmra.mrb[4].mxu1 %vm1198_vm5, %v1166_v47  ;;  %v1450_v1 = vsel %vm1448_vm6, %v1194_v62, 0 }
 0x27b   : > { %4515 = vmatprep.mubr.msk.bf16.mxu1 %vm4899_vm2, %v4898_v10 }
 0x27c   : > { %1160 = vrot.lane.b32.xlu1 %v1025_v34, %s4901_s19 }
 0x280   : > { %1163 = vrot.lane.b32.xlu1 %v1025_v34, %s4902_s24 }
 0x2e2   : > { %v1172_v49 = vpop.permute.xlu1 %1171  ;;  %v1158_v55 = vpop.permute.xlu0 %1157 }
 0x2e3   : > { %v1181_v50 = vpack.c.bf16 %v1172_v49, %v1172_v49  ;;  %v1167_v59 = vpack.c.bf16 %v1158_v55, %v1158_v55 }
 0x2e5   : > { %v1249_v51 = vsel %vm1198_vm5, %v1181_v50, 0 }
 0x2e6   : > { %v1175_v53 = vpop.permute.xlu1 %1174  ;;  %4508 = vmatpush3.bf16.xpose.msra.mxu0 %v1249_v51 }
 0x2e7   : > { %v1182_v54 = vpack.c.bf16 %v1175_v53, %v1175_v53  ;;  %4519 = vmatprep.subr.bf16.mxu0 %v4898_v10 }
 0x2e9   : > { %v1295_v57 = vsel %vm1198_vm5, %v1182_v54, 0 }
 0x2ea   : > { %v1178_v58 = vpop.permute.xlu1 %1177  ;;  %4514 = vmatpush3.bf16.xpose.msra.mxu1 %v1295_v57 }
 0x2eb   : > { %v1183_v60 = vpack.c.bf16 %v1178_v58, %v1178_v58  ;;  %4525 = vmatprep.subr.bf16.mxu1 %v4898_v10 }
 0x2ed   : > { %v1341_v61 = vsel %vm1198_vm5, %v1183_v60, 0  ;;  %4510 = vmatmul.mubr.msk.bf16.vlgmr.msra.gmra.mrb[8].mxu0 %vm1198_vm5, %v1167_v59 }
 0x2ee   : > { %v1161_v63 = vpop.permute.xlu1 %1160  ;;  %4520 = vmatpush3.bf16.xpose.msra.mxu0 %v1341_v61  ;;  %4521 = vmatprep.mubr.msk.bf16.mxu0 %vm4899_vm2, %v4898_v10 }
 0x2ef   : > { %v1168_v0 = vpack.c.bf16 %v1161_v63, %v1161_v63  ;;  %4531 = vmatprep.subr.bf16.mxu0 %v4898_v10 }
 0x2f1   : > { %4516 = vmatmul.mubr.msk.bf16.vlgmr.msra.gmra.mrb[8].mxu1 %vm1198_vm5, %v1168_v0 }
 0x2f2   : > { %v1164_v2 = vpop.permute.xlu1 %1163  ;;  %4526 = vmatpush3.bf16.msra.mxu1 %v1450_v1  ;;  %4527 = vmatprep.mubr.msk.bf16.mxu1 %vm4899_vm2, %v4898_v10 }
 0x2f3   : > { %v1169_v3 = vpack.c.bf16 %v1164_v2, %v1164_v2  ;;  %4537 = vmatprep.subr.bf16.mxu1 %v4898_v10 }
 0x2f5   : > { %4522 = vmatmul.mubr.msk.bf16.vlgmr.msra.gmra.mrb[12].mxu0 %vm1198_vm5, %v1169_v3 }
 0x2f6   : > { %4533 = vmatprep.mubr.msk.bf16.mxu0 %vm4899_vm2, %v4898_v10 }
 0x34d   : > { %v1239_v12 = vpop.f32.mrb[4].mxu1 }
 0x34e   : > { %v1383_v14 = vmul.f32 0.35355338, %v1239_v12  ;;  %v4505_v15 = vpop.f32.mrb[5].mxu1 }
 0x34f   : > { %v1242_v16 = vpop.f32.mrb[6].mxu1 }
 0x350   : > { %v4506_v17 = vpop.f32.mrb[7].mxu1  ;;  %v1393_v18 = vsel %vm5278_vm8, -1e+09, %v1383_v14 }
 0x351   : > { %v1397_v19 = vsel %vm1198_vm5, %v1393_v18, -inf }
 0x352   : > { %1398 = vmax.xlane.f32.xlu1 %v1397_v19 }
 0x3c0   : > { %v1285_v20 = vpop.f32.mrb[8].mxu0 }
 0x3c1   : > { %v1384_v21 = vmul.f32 0.35355338, %v1285_v20  ;;  %v4511_v22 = vpop.f32.mrb[9].mxu0 }
 0x3c2   : > { %v1288_v23 = vpop.f32.mrb[10].mxu0 }
 0x3c3   : > { %v4512_v24 = vpop.f32.mrb[11].mxu0  ;;  %v1394_v25 = vsel %vm5278_vm8, -1e+09, %v1384_v21 }
 0x3c4   : > { %v1331_v26 = vpop.f32.mrb[8].mxu1  ;;  %v1400_v27 = vsel %vm1198_vm5, %v1394_v25, -inf }
 0x3c5   : > { %v1385_v28 = vmul.f32 0.35355338, %v1331_v26  ;;  %v4517_v29 = vpop.f32.mrb[9].mxu1  ;;  %1401 = vmax.xlane.f32.xlu0 %v1400_v27 }
 0x3c6   : > { %v1334_v30 = vpop.f32.mrb[10].mxu1 }
 0x3c7   : > { %v4518_v31 = vpop.f32.mrb[11].mxu1  ;;  %v1395_v32 = vsel %vm5278_vm8, -1e+09, %v1385_v28  ;;  %v4643_v30 = vld [vmem:[%s5786_s3] sm:$0xff]  }
 0x3c8   : > { %v1377_v33 = vpop.f32.mrb[12].mxu0  ;;  %v1403_v34 = vsel %vm1198_vm5, %v1395_v32, -inf }
 0x3c9   : > { %v1386_v35 = vmul.f32 0.35355338, %v1377_v33  ;;  %1404 = vmax.xlane.f32.xlu1 %v1403_v34  ;;  %v4523_v36 = vpop.f32.mrb[13].mxu0 }
 0x3ca   : > { %v1380_v37 = vpop.f32.mrb[14].mxu0 }
 0x3cb   : > { %v4524_v38 = vpop.f32.mrb[15].mxu0  ;;  %v1396_v39 = vsel %vm5278_vm8, -1e+09, %v1386_v35 }
 0x3cc   : > { %v1406_v40 = vsel %vm1198_vm5, %v1396_v39, -inf }
 0x3cd   : > { %1407 = vmax.xlane.f32.xlu1 %v1406_v40 }
 0x3df   : > { %v1399_v41 = vpop.xlane.xlu1 %1398 }
 0x3e0   : > { %v1409_v42 = vsub.f32 %v1393_v18, %v1399_v41 }
 0x3e2   : > { %v1413_v43 = vmul.f32 1.442695, %v1409_v42 }
 0x3e4   : > { %4777 = vpow2.f32 %v1413_v43 }
 0x3ee   : > { %v4778_v44 = vpop.eup %4777 }
 0x3ef   : > { %v1421_v45 = vsel %vm1198_vm5, %v4778_v44, 0.0 }
 0x3f0   : > { %1422 = vadd.xlane.f32.xlu0 %v1421_v45 }
 0x452   : > { %v1402_v46 = vpop.xlane.xlu0 %1401 }
 0x453   : > { %v1410_v47 = vsub.f32 %v1394_v25, %v1402_v46 }
 0x455   : > { %v1415_v48 = vmul.f32 1.442695, %v1410_v47 }
 0x456   : > { %v1405_v49 = vpop.xlane.xlu1 %1404 }
 0x457   : > { %4779 = vpow2.f32 %v1415_v48  ;;  %v1411_v50 = vsub.f32 %v1395_v32, %v1405_v49 }
 0x459   : > { %v1417_v51 = vmul.f32 1.442695, %v1411_v50  ;;  %v4086_v50 = vld [vmem:[%s5787_s28] ss:$0 sm:$0xff]  ;;  %s5798_s28 = sld [smem:[#allocation36_spill]] }
 0x45a   : > { %v1408_v58 = vpop.xlane.xlu1 %1407 }
 0x45b   : > { %4781 = vpow2.f32 %v1417_v51  ;;  %v1412_v59 = vsub.f32 %v1396_v39, %v1408_v58  ;;  %v4644_v39 = vld [vmem:[%s5786_s3 + $0x8] sm:$0xff]  }
 0x45d   : > { %v1419_v60 = vmul.f32 1.442695, %v1412_v59 }
 0x461   : > { %v4780_v52 = vpop.eup %4779 }
 0x462   : > { %v1424_v53 = vsel %vm1198_vm5, %v4780_v52, 0.0 }
 0x463   : > { %1425 = vadd.xlane.f32.xlu1 %v1424_v53 }
 0x465   : > { %v4782_v54 = vpop.eup %4781 }
 0x466   : > { %v1427_v55 = vsel %vm1198_vm5, %v4782_v54, 0.0 }
 0x467   : > { %1428 = vadd.xlane.f32.xlu0 %v1427_v55  ;;  %v4801_v55 = vld [vmem:[%s5175_s6] sm:$0xff] }
 0x474   : > { %1188 = vrot.lane.b32.xlu1 %v5247_v56, %s4901_s19 }
 0x47d   : > { %1185 = vrot.lane.b32.xlu0 %v5247_v56, %s4900_s0  ;;  %v1423_v57 = vpop.xlane.xlu0 %1422 }
 0x47e   : > { %4783 = vrcp.f32 %v1423_v57 }
 0x47f   : > { %4785 = vpow2.f32 %v1419_v60 }
 0x488   : > { %v4784_v61 = vpop.eup %4783 }
 0x489   : > { %v1437_v62 = vmul.f32 %v4784_v61, %v4778_v44  ;;  %v4786_v0 = vpop.eup %4785 }
 0x48a   : > { %v1430_v1 = vsel %vm1198_vm5, %v4786_v0, 0.0 }
 0x48b   : > { %v1441_v63 = vpack.c.bf16 %v1437_v62, %v1437_v62 }
 0x48d   : > { %4528 = vmatmul.mubr.msk.bf16.vlgmr.msra.gmra.mrb[12].mxu1 %vm1198_vm5, %v1441_v63 }
 0x48e   : > { %4539 = vmatprep.mubr.msk.bf16.mxu1 %vm4899_vm2, %v4898_v10 }
 0x498   : > { %1431 = vadd.xlane.f32.xlu1 %v1430_v1  ;;  %v1752_v1 = vld [vmem:[%s5163_s4] sm:$0xff] }
 0x4a9   : > { %1191 = vrot.lane.b32.xlu1 %v5247_v56, %s4902_s24  ;;  %s4907_s24 = smov [#allocation2]  }
 0x4aa   : > { %s4806_s2 = sshll.u32 %s4907_s24, 4  ;;  %s4807_s2 = int_to_ptr.vmem [resolvable:$false] %s4806_s2 }
 0x4f0   : > { %v1426_v2 = vpop.xlane.xlu1 %1425 }
 0x4f1   : > { %4787 = vrcp.f32 %v1426_v2  ;;  %v1760_v2 = vld [vmem:[%s5163_s4 + $0x40] sm:$0xff] }
 0x4f4   : > { %v1429_v3 = vpop.xlane.xlu0 %1428  ;;  %v1189_v4 = vpop.permute.xlu1 %1188 }
 0x4f5   : > { %4789 = vrcp.f32 %v1429_v3  ;;  %v1196_v5 = vpack.c.bf16 %v1189_v4, %v1189_v4  ;;  %v1753_v3 = vld [vmem:[%s5163_s4 + $0x8] sm:$0xff]  ;;  %v4093_v4 = vcombine.high %v1752_v1, %v1760_v2 }
 0x4f7   : > { %v1542_v9 = vsel %vm1448_vm6, %v1196_v5, 0  ;;  %v1761_v5 = vld [vmem:[%s5163_s4 + $0x48] sm:$0xff] }
 0x4f8   : > { %v1186_v11 = vpop.permute.xlu0 %1185  ;;  %4538 = vmatpush3.bf16.msra.mxu1 %v1542_v9  ;;  %v4092_v9 = vcombine.low %v1752_v1, %v1760_v2  ;;  %v1758_v2 = vld [vmem:[%s5163_s4 + $0x30] sm:$0xff] }
 0x4f9   : > { %v1195_v12 = vpack.c.bf16 %v1186_v11, %v1186_v11  ;;  %4549 = vmatprep.subr.bf16.mxu1 %v4898_v10  ;;  %v4094_v11 = vcombine.low %v1753_v3, %v1761_v5 }
 0x4fb   : > { %v4788_v13 = vpop.eup %4787  ;;  %v1496_v14 = vsel %vm1448_vm6, %v1195_v12, 0  ;;  %v4095_v12 = vcombine.high %v1753_v3, %v1761_v5  ;;  %v1766_v3 = vld [vmem:[%s5163_s4 + $0x70] sm:$0xff]  ;;  %v1767_v5 = vld [vmem:[%s5163_s4 + $0x78] sm:$0xff] }
 0x4fc   : > { %v1438_v15 = vmul.f32 %v4788_v13, %v4780_v52  ;;  %4532 = vmatpush3.bf16.msra.mxu0 %v1496_v14  ;;  %v1768_v13 = vld [vmem:[%s5163_s4 + $0x80] sm:$0xff] }
 0x4fd   : > { %4543 = vmatprep.subr.bf16.mxu0 %v4898_v10  ;;  %v1776_v14 = vld [vmem:[%s5163_s4 + $0xc0] sm:$0xff] }
 0x4fe   : > { %v1442_v56 = vpack.c.bf16 %v1438_v15, %v1438_v15  ;;  %v1769_v15 = vld [vmem:[%s5163_s4 + $0x88] sm:$0xff] }
 0x4ff   : > { %v4790_v16 = vpop.eup %4789 }
 0x500   : > { %v1439_v17 = vmul.f32 %v4790_v16, %v4782_v54  ;;  %4534 = vmatmul.mubr.msk.bf16.vlgmr.msra.gmra.mrb[16].mxu0 %vm1198_vm5, %v1442_v56  ;;  %v4108_v56 = vcombine.low %v1768_v13, %v1776_v14  ;;  %v4109_v16 = vcombine.high %v1768_v13, %v1776_v14  ;;  %v1774_v14 = vld [vmem:[%s5163_s4 + $0xb0] sm:$0xff] }
 0x501   : > { %4545 = vmatprep.mubr.msk.bf16.mxu0 %vm4899_vm2, %v4898_v10 }
 0x502   : > { %v1443_v18 = vpack.c.bf16 %v1439_v17, %v1439_v17  ;;  %v1777_v17 = vld [vmem:[%s5163_s4 + $0xc8] sm:$0xff] }
 0x504   : > { %4540 = vmatmul.mubr.msk.bf16.vlgmr.msra.gmra.mrb[16].mxu1 %vm1198_vm5, %v1443_v18  ;;  %v4110_v18 = vcombine.low %v1769_v15, %v1777_v17 }
 0x505   : > { %4553 = vmatprep.mubr.msk.bf16.mxu1 %vm4899_vm2, %v4898_v10  ;;  %4550 = vmatpush3.bf16.msra.mxu1 %v4643_v30 }
 0x506   : > { %4551 = vmatprep.subr.bf16.mxu1 %v4898_v10 }
 0x509   : > { %4552 = vmatpush3.bf16.msra.mxu1 %v4644_v39  ;;  %v4091_v39 = vld [vmem:[%s5790_s22] ss:$0 sm:$0xff]  ;;  %s4808_s22 = scalar_lea.vmem %s4807_s2, 256 }
 0x50a   : > { %2072 = vmatprep.subr.bf16.mxu1 %v4095_v12  ;;  %v4105_v12 = vcombine.high %v1758_v2, %v1766_v3 }
 0x525   : > { %v1432_v19 = vpop.xlane.xlu1 %1431 }
 0x526   : > { %4791 = vrcp.f32 %v1432_v19  ;;  %v4111_v19 = vcombine.high %v1769_v15, %v1777_v17  ;;  %v1782_v15 = vld [vmem:[%s5163_s4 + $0xf0] sm:$0xff]  ;;  %v4104_v17 = vcombine.low %v1758_v2, %v1766_v3 }
 0x529   : > { %v1192_v20 = vpop.permute.xlu1 %1191 }
 0x52a   : > { %v1197_v21 = vpack.c.bf16 %v1192_v20, %v1192_v20  ;;  %v1754_v20 = vld [vmem:[%s5163_s4 + $0x10] sm:$0xff] }
 0x52c   : > { %v1588_v22 = vsel %vm1448_vm6, %v1197_v21, 0  ;;  %v1762_v21 = vld [vmem:[%s5163_s4 + $0x50] sm:$0xff] }
 0x52d   : > { %4544 = vmatpush3.bf16.msra.mxu0 %v1588_v22  ;;  %v1755_v22 = vld [vmem:[%s5163_s4 + $0x18] sm:$0xff] }
 0x52e   : > { %2031 = vmatprep.subr.bf16.mxu0 %v4093_v4  ;;  %v1759_v4 = vld [vmem:[%s5163_s4 + $0x38] sm:$0xff] }
 0x52f   : > { %v4107_v13 = vcombine.high %v1759_v4, %v1767_v5 }
 0x530   : > { %v4792_v23 = vpop.eup %4791 }
 0x531   : > { %v1440_v24 = vmul.f32 %v4792_v23, %v4786_v0  ;;  %v4097_v23 = vcombine.high %v1754_v20, %v1762_v21 }
 0x533   : > { %v1444_v25 = vpack.c.bf16 %v1440_v24, %v1440_v24  ;;  %v1763_v24 = vld [vmem:[%s5163_s4 + $0x58] sm:$0xff] }
 0x535   : > { %4546 = vmatmul.mubr.msk.bf16.vlgmr.msra.gmra.mrb[20].mxu0 %vm1198_vm5, %v1444_v25  ;;  %v4096_v25 = vcombine.low %v1754_v20, %v1762_v21  ;;  %v4120_v21 = vcombine.low %v1774_v14, %v1782_v15 }
 0x536   : > { %2063 = vmatprep.mubr.bf16.mxu0 %v4903_v8  ;;  %2032 = vmatpush1.bf16.msra.mxu0 %v4092_v9 }
 0x537   : > { %2033 = vmatprep.subr.bf16.mxu0 %v4109_v16  ;;  %v1783_v16 = vld [vmem:[%s5163_s4 + $0xf8] sm:$0xff] }
 0x53a   : > { %2034 = vmatpush1.bf16.msra.mxu0 %v4108_v56  ;;  %v1775_v56 = vld [vmem:[%s5163_s4 + $0xb8] sm:$0xff] }
 0x53b   : > { %2113 = vmatprep.subr.bf16.mxu0 %v4097_v23  ;;  %v4123_v20 = vcombine.high %v1775_v56, %v1783_v16  ;;  %v4645_v23 = vld [vmem:[%s5169_s17 + $0x40] sm:$0xff]  }
 0x560   : > { %v1486_v26 = vpop.f32.mrb[12].mxu1 }
 0x561   : > { %v4529_v27 = vpop.f32.mrb[13].mxu1 }
 0x562   : > { %v1489_v28 = vpop.f32.mrb[14].mxu1  ;;  %v4099_v27 = vcombine.high %v1755_v22, %v1763_v24 }
 0x563   : > { %v4530_v29 = vpop.f32.mrb[15].mxu1 }
 0x5d3   : > { %v1532_v31 = vpop.f32.mrb[16].mxu0 }
 0x5d4   : > { %1631 = vrot.lane.b32.xlu0 %v1532_v31, %s4904_s23  ;;  %v4535_v32 = vpop.f32.mrb[17].mxu0  ;;  %s5797_s23 = sld [smem:[#allocation35_spill]] }
 0x5d5   : > { %v1535_v33 = vpop.f32.mrb[18].mxu0 }
 0x5d6   : > { %v4536_v34 = vpop.f32.mrb[19].mxu0 }
 0x5d7   : > { %v1578_v35 = vpop.f32.mrb[16].mxu1 }
 0x5d8   : > { %1635 = vrot.lane.b32.xlu1 %v1578_v35, %s4905_s18  ;;  %v4541_v36 = vpop.f32.mrb[17].mxu1 }
 0x5d9   : > { %v1581_v37 = vpop.f32.mrb[18].mxu1  ;;  %v4090_v36 = vld [vmem:[%s893_s16] ss:$0 sm:$0xff] }
 0x5da   : > { %v4542_v38 = vpop.f32.mrb[19].mxu1 }
 0x608   : > { %v1624_v40 = vpop.f32.mrb[20].mxu0 }
 0x609   : > { %1639 = vrot.lane.b32.xlu0 %v1624_v40, %s4906_s21  ;;  %v4547_v41 = vpop.f32.mrb[21].mxu0  ;;  %s3799_s21 = sshll.u32 %s5175_s6, 4  ;;  %s5632_s21 = int_to_ptr.vmem [resolvable:$true] %s3799_s21 }
 0x60a   : > { %v1627_v10 = vpop.f32.mrb[22].mxu0  ;;  %v1770_v41 = vld [vmem:[%s5163_s4 + $0x90] sm:$0xff]  ;;  %s4802_s19 = scalar_lea.vmem %s5632_s21, 128  ;;  %p4809_p6 = scmp.lt.s32.totalorder %s5632_s21, %s4807_s2 }
 0x60b   : > { %v4548_v42 = vpop.f32.mrb[23].mxu0  ;;  %v1778_v10 = vld [vmem:[%s5163_s4 + $0xd0] sm:$0xff]  ;;  %p4803_p2 = scmp.ne.s32.totalorder %s5632_s21, %s4802_s19  ;;  %p4810_p7 = scmp.lt.s32.totalorder %s4808_s22, %s4802_s19 }
 0x60c   : > { %v1771_v42 = vld [vmem:[%s5163_s4 + $0x98] sm:$0xff] }
 0x60d   : > { %p4804_p4 = pnand %p4803_p2, %p5062_p3  ;;  %p4811_p8 = por %p4810_p7, %p4809_p6 }
 0x60f   : > { %p4805_p5 = pneg %p4804_p4 }
 0x611   : > { %p4812_p10 = pnand %p4811_p8, %p4805_p5 }
 0x646   : > { %v1632_v43 = vpop.permute.xlu0 %1631 }
 0x647   : > { %v1642_v45 = vsel %vm1198_vm5, %v1486_v26, %v1632_v43  ;;  %v4098_v26 = vcombine.low %v1755_v22, %v1763_v24  ;;  %v1779_v43 = vld [vmem:[%s5163_s4 + $0xd8] sm:$0xff]  ;;  %v4122_v22 = vcombine.low %v1775_v56, %v1783_v16  ;;  %v4646_v24 = vld [vmem:[%s5169_s17 + $0xc0] sm:$0xff]  }
 0x64a   : > { %v1636_v44 = vpop.permute.xlu1 %1635 }
 0x64b   : > { %v1644_v46 = vsel %vm1643_vm9, %v1642_v45, %v1636_v44 }
 0x67b   : > { %v1640_v47 = vpop.permute.xlu0 %1639 }
 0x67c   : > { %v1646_v48 = vsel %vm1645_vm10, %v1644_v46, %v1640_v47  ;;  %v4113_v46 = vcombine.high %v1770_v41, %v1778_v10  ;;  %v4115_v47 = vcombine.high %v1771_v42, %v1779_v43 }
 0x67d   : > { %v1647_v49 = vpack.c.bf16 %v1646_v48, %v1646_v48  ;;  %v1756_v48 = vld [vmem:[%s5163_s4 + $0x20] sm:$0xff] }
 0x67f   : > { %4554 = vmatmul.mubr.msk.bf16.vlgmr.msra.gmra.mrb[20].mxu1 %vm927_vm1, %v1647_v49  ;;  %v1764_v49 = vld [vmem:[%s5163_s4 + $0x60] sm:$0xff] }
 0x680   : > { %2104 = vmatprep.mubr.bf16.mxu1 %v4903_v8  ;;  %2073 = vmatpush1.bf16.msra.mxu1 %v4094_v11 }
 0x681   : > { %2074 = vmatprep.subr.bf16.mxu1 %v4111_v19  ;;  %v4121_v19 = vcombine.high %v1774_v14, %v1782_v15 }
 0x684   : > { %2075 = vmatpush1.bf16.msra.mxu1 %v4110_v18  ;;  %v4106_v18 = vcombine.low %v1759_v4, %v1767_v5 }
 0x685   : > { %2154 = vmatprep.subr.bf16.mxu1 %v4099_v27  ;;  %v4649_v27 = vld [vmem:[%s5169_s17 + $0x48] sm:$0xff]  }
 0x752   : > { %v1708_v51 = vpop.f32.mrb[20].mxu1 }
 0x753   : > { %v1709_v52 = vadd.f32 %v4086_v50, %v1708_v51  ;;  %v4555_v53 = vpop.f32.mrb[21].mxu1  ;;  %v1757_v50 = vld [vmem:[%s5163_s4 + $0x28] sm:$0xff] }
 0x754   : > { %v1711_v54 = vpop.f32.mrb[22].mxu1  ;;  %v1765_v51 = vld [vmem:[%s5163_s4 + $0x68] sm:$0xff]  ;;  %v4114_v53 = vcombine.low %v1771_v42, %v1779_v43 }
 0x755   : > { %v5332_v57 = vadd.f32 %v4801_v55, %v1709_v52  ;;  %v4556_v58 = vpop.f32.mrb[23].mxu1  ;;  %v4112_v52 = vcombine.low %v1770_v41, %v1778_v10  ;;  %v4101_v54 = vcombine.high %v1756_v48, %v1764_v49  ;;  %v4103_v55 = vcombine.high %v1757_v50, %v1765_v51  ;;  %v4664_v41 = vld [vmem:[%s5169_s17 + $0xa0] sm:$0xff]   ;;  %v4665_v10 = vld [vmem:[%s5169_s17 + $0x68] sm:$0xff]  }
 0x756   : > { %v1772_v58 = vld [vmem:[%s5163_s4 + $0xa0] sm:$0xff]  ;;  %v4666_v42 = vld [vmem:[%s5169_s17 + $0xe8] sm:$0xff]  }
 0x757   : > { %v1717_v59 = vsel %vm927_vm1, %v5332_v57, 0.0  ;;  %v4667_v43 = vld [vmem:[%s5169_s17 + $0x28] sm:$0xff]  }
 0x758   : > { %1718 = vadd.xlane.f32.xlu1 %v1717_v59  ;;  %v1780_v59 = vld [vmem:[%s5163_s4 + $0xe0] sm:$0xff] }
 0x759   : > { %v4116_v9 = vcombine.low %v1772_v58, %v1780_v59 }
 0x7e5   : > { %v1719_v60 = vpop.xlane.xlu1 %1718 }
 0x7e6   : > { %v1720_v61 = vmul.f32 0.03125, %v1719_v60  ;;  %v1773_v60 = vld [vmem:[%s5163_s4 + $0xa8] sm:$0xff] }
 0x7e8   : > { %v1721_v62 = vsub.f32 %v5332_v57, %v1720_v61  ;;  %v1781_v61 = vld [vmem:[%s5163_s4 + $0xe8] sm:$0xff] }
 0x7e9   : > { %v4119_v1 = vcombine.high %v1773_v60, %v1781_v61  ;;  %v4118_v11 = vcombine.low %v1773_v60, %v1781_v61  ;;  %v1798_v60 = vsub.s32 2, %v5271_v6  ;;  %v5449_v61 = vld [vmem:[%s5158_s1] sm:$0xff] }
 0x7ea   : > { %v1722_v63 = vmul.f32 %v1721_v62, %v1721_v62  ;;  %v1742_v37 = vmul.f32 %v4090_v36, %v1721_v62  ;;  %v4100_v62 = vcombine.low %v1756_v48, %v1764_v49  ;;  %v4659_v36 = vld [vmem:[%s5169_s17 + $0x18] sm:$0xff]   ;;  %v4672_v48 = vld [vmem:[%s5169_s17 + $0xb0] sm:$0xff]  }
 0x7eb   : > { %v4673_v49 = vld [vmem:[%s5169_s17 + $0x78] sm:$0xff]  }
 0x7ec   : > { %v1723_v0 = vsel %vm927_vm1, %v1722_v63, 0.0  ;;  %v4102_v63 = vcombine.low %v1757_v50, %v1765_v51  ;;  %v4674_v50 = vld [vmem:[%s5169_s17 + $0xf8] sm:$0xff]  }
 0x7ed   : > { %1724 = vadd.xlane.f32.xlu0 %v1723_v0  ;;  %v4117_v0 = vcombine.high %v1772_v58, %v1780_v59  ;;  %v4675_v51 = vld [vmem:[%s5169_s17 + $0x38] sm:$0xff]   ;;  %v5440_v58 = vld [vmem:[%s5158_s1 + $0x8] sm:$0xff] }
 0x87a   : > { %v1725_v28 = vpop.xlane.xlu0 %1724 }
 0x87b   : > { %v1726_v29 = vmul.f32 0.032258064, %v1725_v28  ;;  %v4650_v28 = vld [vmem:[%s5169_s17 + $0xc8] sm:$0xff]  }
 0x87d   : > { %4793 = vrsqrt.f32 %v1726_v29  ;;  %vm1729_vm11 = vcmp.eq.f32.partialorder %v1726_v29, inf  ;;  %v1732_v32 = vand.u32 2147483648, %v1726_v29  ;;  %vm1731_vm12 = vcmp.eq.f32.partialorder %v1726_v29, 0.0 }
 0x887   : > { %v4794_v30 = vpop.eup %4793 }
 0x888   : > { %v1728_v31 = vmul.f32 %v4794_v30, %v1726_v29  ;;  %v4653_v30 = vld [vmem:[%s5169_s17 + $0x50] sm:$0xff]  }
 0x88a   : > { %v1730_v33 = vsel %vm1729_vm11, %v1726_v29, %v1728_v31  ;;  %v4652_v29 = vld [vmem:[%s5169_s17 + $0x88] sm:$0xff]   ;;  %v4654_v31 = vld [vmem:[%s5169_s17 + $0xd0] sm:$0xff]  }
 0x88b   : > { %v1733_v34 = vsel %vm1731_vm12, %v1732_v32, %v1730_v33  ;;  %v4655_v32 = vld [vmem:[%s5169_s17 + $0x10] sm:$0xff]  }
 0x88c   : > { %v1734_v35 = vadd.f32 1e-06, %v1733_v34  ;;  %v4656_v33 = vld [vmem:[%s5169_s17 + $0x90] sm:$0xff]   ;;  %v4657_v34 = vld [vmem:[%s5169_s17 + $0x58] sm:$0xff]  }
 0x88e   : > { %4795 = vrcp.f32 %v1734_v35  ;;  %v4658_v35 = vld [vmem:[%s5169_s17 + $0xd8] sm:$0xff]  }
 0x898   : > { %v4796_v38 = vpop.eup %4795 }
 0x899   : > { %v1743_v40 = vmul.f32 %v4796_v38, %v1742_v37  ;;  %v4660_v37 = vld [vmem:[%s5169_s17 + $0x98] sm:$0xff]   ;;  %v4661_v38 = vld [vmem:[%s5169_s17 + $0x60] sm:$0xff]  }
 0x89b   : > { %v1750_v44 = vadd.f32 %v4091_v39, %v1743_v40  ;;  %v4662_v39 = vld [vmem:[%s5169_s17 + $0xe0] sm:$0xff]  }
 0x89c   : > { %v4663_v40 = vld [vmem:[%s5169_s17 + $0x20] sm:$0xff]  }
 0x89d   : > { %v5364_v45 = vpack.c.bf16 %v1750_v44, %v1750_v44  ;;  %v4668_v44 = vld [vmem:[%s5169_s17 + $0xa8] sm:$0xff]  }
 0x89f   : > { %4124 = vmatmul.mubr.msk.bf16.vlgmr.msra.gmra.mrb[24].mxu0 %vm927_vm1, %v5364_v45  ;;  %4125 = vmatmul.mubr.msk.bf16.vlgmr.msra.gmra.mrb[24].mxu1 %vm927_vm1, %v5364_v45 }
 0x8a0   : > { %2114 = vmatpush1.bf16.msra.mxu0 %v4096_v25  ;;  %2155 = vmatpush1.bf16.msra.mxu1 %v4098_v26  ;;  %v4647_v25 = vld [vmem:[%s5169_s17] sm:$0xff]  }
 0x8a1   : > { %2115 = vmatprep.subr.bf16.mxu0 %v4113_v46  ;;  %2156 = vmatprep.subr.bf16.mxu1 %v4115_v47  ;;  %v4648_v26 = vld [vmem:[%s5169_s17 + $0x80] sm:$0xff]   ;;  %v4670_v46 = vld [vmem:[%s5169_s17 + $0xf0] sm:$0xff]  }
 0x8a2   : > { %2145 = vmatprep.mubr.bf16.mxu0 %v4903_v8  ;;  %2186 = vmatprep.mubr.bf16.mxu1 %v4903_v8  ;;  %v4671_v47 = vld [vmem:[%s5169_s17 + $0x30] sm:$0xff]  }
 0x8a4   : > { %2116 = vmatpush1.bf16.msra.mxu0 %v4112_v52  ;;  %2157 = vmatpush1.bf16.msra.mxu1 %v4114_v53  ;;  %v4676_v52 = vld [vmem:[%s5169_s17 + $0xb8] sm:$0xff]   ;;  %v4677_v53 = vld [vmem:[%s5169_s17 + $0x140] sm:$0xff]  }
 0x8a5   : > { %2195 = vmatprep.subr.bf16.mxu0 %v4101_v54  ;;  %2236 = vmatprep.subr.bf16.mxu1 %v4103_v55  ;;  %v4678_v54 = vld [vmem:[%s5169_s17 + $0x1c0] sm:$0xff]   ;;  %v1814_v55 = vsub.s32 6, %v5271_v6 }
 0x8a7   : > { %4126 = vmatmul.mubr.msk.bf16.vlgmr.msra.gmra.mrb[28].mxu0 %vm927_vm1, %v5364_v45  ;;  %4127 = vmatmul.mubr.msk.bf16.vlgmr.msra.gmra.mrb[28].mxu1 %vm927_vm1, %v5364_v45  ;;  %v5445_v59 = vrot.slane %v5440_v58, %v1814_v55 }
 0x8a8   : > { %2196 = vmatpush1.bf16.msra.mxu0 %v4100_v62  ;;  %2237 = vmatpush1.bf16.msra.mxu1 %v4102_v63  ;;  %v1794_v62 = vsub.s32 1, %v5271_v6  ;;  %v1802_v63 = vsub.s32 3, %v5271_v6 }
 0x8a9   : > { %2197 = vmatprep.subr.bf16.mxu0 %v4117_v0  ;;  %2238 = vmatprep.subr.bf16.mxu1 %v4119_v1  ;;  %v1791_v0 = vrot.slane %v5449_v61, %v5274_v7  ;;  %v1799_v1 = vrot.slane %v5449_v61, %v1798_v60 }
 0x8aa   : > { %2227 = vmatprep.mubr.bf16.mxu0 %v4903_v8  ;;  %2268 = vmatprep.mubr.bf16.mxu1 %v4903_v8  ;;  %v1795_v2 = vrot.slane %v5449_v61, %v1794_v62  ;;  %v1803_v3 = vrot.slane %v5449_v61, %v1802_v63 }
 0x8ac   : > { %2198 = vmatpush1.bf16.msra.mxu0 %v4116_v9  ;;  %2239 = vmatpush1.bf16.msra.mxu1 %v4118_v11 }
 0x8ad   : > { %2277 = vmatprep.subr.bf16.mxu0 %v4105_v12  ;;  %2318 = vmatprep.subr.bf16.mxu1 %v4107_v13 }
 0x8af   : > { %4128 = vmatmul.mubr.msk.bf16.vlgmr.msra.gmra.mrb[32].mxu0 %vm927_vm1, %v5364_v45  ;;  %4129 = vmatmul.mubr.msk.bf16.vlgmr.msra.gmra.mrb[32].mxu1 %vm927_vm1, %v5364_v45 }
 0x8b0   : > { %2278 = vmatpush1.bf16.msra.mxu0 %v4104_v17  ;;  %2319 = vmatpush1.bf16.msra.mxu1 %v4106_v18  ;;  %v1810_v17 = vsub.s32 5, %v5271_v6  ;;  %v1818_v18 = vsub.s32 7, %v5271_v6 }
 0x8b1   : > { %2279 = vmatprep.subr.bf16.mxu0 %v4121_v19  ;;  %2320 = vmatprep.subr.bf16.mxu1 %v4123_v20 }
 0x8b2   : > { %2309 = vmatprep.mubr.bf16.mxu0 %v4903_v8  ;;  %2350 = vmatprep.mubr.bf16.mxu1 %v4903_v8  ;;  %v4651_v8 = vld [vmem:[%s5169_s17 + $0x8] sm:$0xff]  }
 0x8b4   : > { %2280 = vmatpush1.bf16.msra.mxu0 %v4120_v21  ;;  %2321 = vmatpush1.bf16.msra.mxu1 %v4122_v22 }
 0x8b5   : > { %4301 = vmatprep.subr.bf16.mxu0 %v4645_v23  ;;  %4323 = vmatprep.subr.bf16.mxu1 %v4646_v24 }
 0x8b7   : > { %4130 = vmatmul.mubr.msk.bf16.vlgmr.msra.gmra.mrb[36].mxu0 %vm927_vm1, %v5364_v45  ;;  %4131 = vmatmul.mubr.msk.bf16.vlgmr.msra.gmra.mrb[36].mxu1 %vm927_vm1, %v5364_v45  ;;  %v4669_v45 = vld [vmem:[%s5169_s17 + $0x70] sm:$0xff]  }
 0x8b8   : > { %4302 = vmatpush3.bf16.msra.mxu0 %v4647_v25  ;;  %4324 = vmatpush3.bf16.msra.mxu1 %v4648_v26 }
 0x8b9   : > { %4303 = vmatprep.subr.bf16.mxu0 %v4649_v27  ;;  %4325 = vmatprep.subr.bf16.mxu1 %v4650_v28  ;;  %v1811_v27 = vrot.slane %v5449_v61, %v1810_v17  ;;  %v1819_v28 = vrot.slane %v5449_v61, %v1818_v18 }
 0x8bc   : > { %4304 = vmatpush3.bf16.msra.mxu0 %v4651_v8  ;;  %4326 = vmatpush3.bf16.msra.mxu1 %v4652_v29  ;;  %v4679_v8 = vld [vmem:[%s5169_s17 + $0x100] sm:$0xff]  }
 0x8bd   : > { %4305 = vmatprep.subr.bf16.mxu0 %v4653_v30  ;;  %4327 = vmatprep.subr.bf16.mxu1 %v4654_v31  ;;  %v4680_v29 = vld [vmem:[%s5169_s17 + $0x180] sm:$0xff]  }
 0x8c0   : > { %4306 = vmatpush3.bf16.msra.mxu0 %v4655_v32  ;;  %4328 = vmatpush3.bf16.msra.mxu1 %v4656_v33  ;;  %v4681_v32 = vld [vmem:[%s5169_s17 + $0x148] sm:$0xff]  }
 0x8c1   : > { %4307 = vmatprep.subr.bf16.mxu0 %v4657_v34  ;;  %4329 = vmatprep.subr.bf16.mxu1 %v4658_v35  ;;  %v4682_v33 = vld [vmem:[%s5169_s17 + $0x1c8] sm:$0xff]  }
 0x8c4   : > { %4308 = vmatpush3.bf16.msra.mxu0 %v4659_v36  ;;  %4330 = vmatpush3.bf16.msra.mxu1 %v4660_v37 }
 0x8c5   : > { %4309 = vmatprep.subr.bf16.mxu0 %v4661_v38  ;;  %4331 = vmatprep.subr.bf16.mxu1 %v4662_v39 }
 0x8c8   : > { %4310 = vmatpush3.bf16.msra.mxu0 %v4663_v40  ;;  %4332 = vmatpush3.bf16.msra.mxu1 %v4664_v41 }
 0x8c9   : > { %4311 = vmatprep.subr.bf16.mxu0 %v4665_v10  ;;  %4333 = vmatprep.subr.bf16.mxu1 %v4666_v42  ;;  %v4683_v10 = vld [vmem:[%s5169_s17 + $0x108] sm:$0xff]  }
 0x8ca   : > { %v4684_v42 = vld [vmem:[%s5169_s17 + $0x188] sm:$0xff]  }
 0x8cc   : > { %4312 = vmatpush3.bf16.msra.mxu0 %v4667_v43  ;;  %4334 = vmatpush3.bf16.msra.mxu1 %v4668_v44 }
 0x8cd   : > { %4313 = vmatprep.subr.bf16.mxu0 %v4669_v45  ;;  %4335 = vmatprep.subr.bf16.mxu1 %v4670_v46  ;;  %v4685_v45 = vld [vmem:[%s5169_s17 + $0x150] sm:$0xff]  }
 0x8ce   : > { %v4686_v46 = vld [vmem:[%s5169_s17 + $0x1d0] sm:$0xff]  }
 0x8d0   : > { %4314 = vmatpush3.bf16.msra.mxu0 %v4671_v47  ;;  %4336 = vmatpush3.bf16.msra.mxu1 %v4672_v48 }
 0x8d1   : > { %4315 = vmatprep.subr.bf16.mxu0 %v4673_v49  ;;  %4337 = vmatprep.subr.bf16.mxu1 %v4674_v50  ;;  %v1831_v49 = vrot.slane %v5440_v58, %v1798_v60 }
 0x8d4   : > { %4316 = vmatpush3.bf16.msra.mxu0 %v4675_v51  ;;  %4338 = vmatpush3.bf16.msra.mxu1 %v4676_v52  ;;  %v4687_v52 = vld [vmem:[%s5169_s17 + $0x110] sm:$0xff]  }
 0x8d5   : > { %4345 = vmatprep.subr.bf16.mxu0 %v4677_v53  ;;  %4367 = vmatprep.subr.bf16.mxu1 %v4678_v54  ;;  %v4688_v53 = vld [vmem:[%s5169_s17 + $0x190] sm:$0xff]   ;;  %v4689_v54 = vld [vmem:[%s5169_s17 + $0x158] sm:$0xff]  }
 0x972   : > { %v2065_v4 = vpop.f32.mrb[24].mxu0  ;;  %v2106_v5 = vpop.f32.mrb[24].mxu1 }
 0x973   : > { %v2066_v9 = vadd.f32 %v2065_v4, %v1791_v0  ;;  %v2107_v11 = vadd.f32 %v2106_v5, %v1799_v1  ;;  %v2067_v12 = vpop.f32.mrb[25].mxu0  ;;  %v2108_v13 = vpop.f32.mrb[25].mxu1  ;;  %v4690_v0 = vld [vmem:[%s5169_s17 + $0x1d8] sm:$0xff]  }
 0x974   : > { %v2068_v14 = vadd.f32 %v2067_v12, %v1795_v2  ;;  %v2109_v15 = vadd.f32 %v2108_v13, %v1803_v3  ;;  %v2069_v56 = vpop.f32.mrb[26].mxu0  ;;  %v2110_v16 = vpop.f32.mrb[26].mxu1  ;;  %v4692_v12 = vld [vmem:[%s5169_s17 + $0x198] sm:$0xff]   ;;  %v1806_v13 = vsub.s32 4, %v5271_v6 }
 0x975   : > { %v2359_v19 = vmax.f32 %v2066_v9, 0.0  ;;  %v2361_v20 = vmax.f32 %v2107_v11, 0.0  ;;  %v2070_v21 = vpop.f32.mrb[27].mxu0  ;;  %v2111_v22 = vpop.f32.mrb[27].mxu1  ;;  %v4691_v11 = vld [vmem:[%s5169_s17 + $0x118] sm:$0xff]   ;;  %v4693_v56 = vld [vmem:[%s5169_s17 + $0x160] sm:$0xff]  }
 0x976   : > { %v2360_v23 = vmax.f32 %v2068_v14, 0.0  ;;  %v2362_v24 = vmax.f32 %v2109_v15, 0.0  ;;  %v4694_v16 = vld [vmem:[%s5169_s17 + $0x1e0] sm:$0xff]   ;;  %v4697_v22 = vld [vmem:[%s5169_s17 + $0x168] sm:$0xff]  }
 0x977   : > { %v2375_v30 = vpack.c.bf16 %v2359_v19, %v2359_v19  ;;  %v2377_v31 = vpack.c.bf16 %v2361_v20, %v2361_v20  ;;  %v1839_v19 = vrot.slane %v5440_v58, %v1806_v13  ;;  %v4695_v20 = vld [vmem:[%s5169_s17 + $0x120] sm:$0xff]  }
 0x978   : > { %v2376_v25 = vpack.c.bf16 %v2360_v23, %v2360_v23  ;;  %v2378_v26 = vpack.c.bf16 %v2362_v24, %v2362_v24  ;;  %v4696_v21 = vld [vmem:[%s5169_s17 + $0x1a0] sm:$0xff]   ;;  %v4698_v23 = vld [vmem:[%s5169_s17 + $0x1e8] sm:$0xff]  }
 0x97a   : > { %v5474_v34 = vpop.f32.mrb[28].mxu0  ;;  %v5476_v35 = vpop.f32.mrb[28].mxu1  ;;  %3454 = vmatprep.mubr.bf16.mxu0 %v2376_v25  ;;  %3494 = vmatprep.mubr.bf16.mxu1 %v2378_v26 }
 0x97b   : > { %v2149_v36 = vpop.f32.mrb[29].mxu0  ;;  %v2190_v37 = vpop.f32.mrb[29].mxu1  ;;  %3455 = vmatmul.mubr.bf16.vlgmr.msra.gmra.mrb[40].mxu0 %v2375_v30  ;;  %3495 = vmatmul.mubr.bf16.vlgmr.msra.gmra.mrb[40].mxu1 %v2377_v31  ;;  %v4699_v31 = vld [vmem:[%s5169_s17 + $0x128] sm:$0xff]  }
 0x97c   : > { %v2150_v38 = vadd.f32 %v2149_v36, %v1811_v27  ;;  %v2191_v39 = vadd.f32 %v2190_v37, %v1819_v28  ;;  %4346 = vmatpush3.bf16.msra.mxu0 %v4679_v8  ;;  %4368 = vmatpush3.bf16.msra.mxu1 %v4680_v29  ;;  %v2151_v40 = vpop.f32.mrb[30].mxu0  ;;  %v2192_v41 = vpop.f32.mrb[30].mxu1 }
 0x97d   : > { %v2152_v43 = vpop.f32.mrb[31].mxu0  ;;  %v2193_v44 = vpop.f32.mrb[31].mxu1  ;;  %4347 = vmatprep.subr.bf16.mxu0 %v4681_v32  ;;  %4369 = vmatprep.subr.bf16.mxu1 %v4682_v33  ;;  %v4700_v32 = vld [vmem:[%s5169_s17 + $0x1a8] sm:$0xff]   ;;  %v1807_v33 = vrot.slane %v5449_v61, %v1806_v13  ;;  %v1827_v40 = vrot.slane %v5440_v58, %v1794_v62  ;;  %v1835_v41 = vrot.slane %v5440_v58, %v1802_v63  ;;  %v4706_v62 = vld [vmem:[%s5169_s17 + $0x1f8] sm:$0xff]   ;;  %v4719_v13 = vld [vmem:[%s5169_s17 + $0x210] sm:$0xff]  }
 0x97e   : > { %v2364_v47 = vmax.f32 %v2150_v38, 0.0  ;;  %v2366_v48 = vmax.f32 %v2191_v39, 0.0  ;;  %v4701_v38 = vld [vmem:[%s5169_s17 + $0x170] sm:$0xff]   ;;  %v4705_v43 = vld [vmem:[%s5169_s17 + $0x178] sm:$0xff]  }
 0x97f   : > { %v4702_v39 = vld [vmem:[%s5169_s17 + $0x1f0] sm:$0xff]   ;;  %v4707_v63 = vld [vmem:[%s5169_s17 + $0x138] sm:$0xff]  }
 0x980   : > { %v2380_v50 = vpack.c.bf16 %v2364_v47, %v2364_v47  ;;  %v2382_v51 = vpack.c.bf16 %v2366_v48, %v2366_v48  ;;  %4348 = vmatpush3.bf16.msra.mxu0 %v4683_v10  ;;  %4370 = vmatpush3.bf16.msra.mxu1 %v4684_v42  ;;  %v2148_v10 = vadd.f32 %v5474_v34, %v1807_v33  ;;  %v4709_v34 = vld [vmem:[%s5169_s17 + $0x240] sm:$0xff]   ;;  %v4734_v33 = vld [vmem:[%s5169_s17 + $0x2f0] sm:$0xff]  }
 0x981   : > { %4349 = vmatprep.subr.bf16.mxu0 %v4685_v45  ;;  %4371 = vmatprep.subr.bf16.mxu1 %v4686_v46  ;;  %v4708_v46 = vld [vmem:[%s5169_s17 + $0x1b8] sm:$0xff]  }
 0x982   : > { %v5487_v1 = vpop.f32.mrb[32].mxu0  ;;  %v2270_v2 = vpop.f32.mrb[32].mxu1  ;;  %3534 = vmatprep.mubr.bf16.mxu0 %v2380_v50  ;;  %3574 = vmatprep.mubr.bf16.mxu1 %v2382_v51  ;;  %v2363_v47 = vmax.f32 %v2148_v10, 0.0  ;;  %v4711_v51 = vld [vmem:[%s5169_s17 + $0x200] sm:$0xff]  }
 0x983   : > { %v5489_v60 = vadd.f32 %v2270_v2, %v1831_v49  ;;  %v2231_v3 = vpop.f32.mrb[33].mxu0  ;;  %v2272_v4 = vpop.f32.mrb[33].mxu1  ;;  %v4713_v2 = vld [vmem:[%s5169_s17 + $0x248] sm:$0xff]  }
 0x984   : > { %4350 = vmatpush3.bf16.msra.mxu0 %v4687_v52  ;;  %4372 = vmatpush3.bf16.msra.mxu1 %v4688_v53  ;;  %v2233_v5 = vpop.f32.mrb[34].mxu0  ;;  %v2274_v9 = vpop.f32.mrb[34].mxu1  ;;  %v2232_v44 = vadd.f32 %v2231_v3, %v1827_v40  ;;  %v2273_v45 = vadd.f32 %v2272_v4, %v1835_v41  ;;  %v2379_v52 = vpack.c.bf16 %v2363_v47, %v2363_v47  ;;  %v4714_v3 = vld [vmem:[%s5169_s17 + $0x2c8] sm:$0xff]   ;;  %v4738_v40 = vld [vmem:[%s5169_s17 + $0x2f8] sm:$0xff]   ;;  %v4741_v41 = vld [vmem:[%s5169_s17 + $0x340] sm:$0xff]  }
 0x985   : > { %v2234_v14 = vpop.f32.mrb[35].mxu0  ;;  %v2275_v15 = vpop.f32.mrb[35].mxu1  ;;  %4351 = vmatprep.subr.bf16.mxu0 %v4689_v54  ;;  %4373 = vmatprep.subr.bf16.mxu1 %v4690_v0  ;;  %v4712_v54 = vld [vmem:[%s5169_s17 + $0x280] sm:$0xff]   ;;  %v4715_v5 = vld [vmem:[%s5169_s17 + $0x208] sm:$0xff]  }
 0x986   : > { %v2368_v49 = vmax.f32 %v2232_v44, 0.0  ;;  %v2370_v50 = vmax.f32 %v2273_v45, 0.0  ;;  %v4716_v9 = vld [vmem:[%s5169_s17 + $0x288] sm:$0xff]   ;;  %v4720_v14 = vld [vmem:[%s5169_s17 + $0x290] sm:$0xff]   ;;  %v4721_v15 = vld [vmem:[%s5169_s17 + $0x258] sm:$0xff]  }
 0x987   : > { %v4745_v44 = vld [vmem:[%s5169_s17 + $0x348] sm:$0xff]  }
 0x988   : > { %4352 = vmatpush3.bf16.msra.mxu0 %v4691_v11  ;;  %4374 = vmatpush3.bf16.msra.mxu1 %v4692_v12  ;;  %v2384_v0 = vpack.c.bf16 %v2368_v49, %v2368_v49  ;;  %v2386_v4 = vpack.c.bf16 %v2370_v50, %v2370_v50  ;;  %v4717_v11 = vld [vmem:[%s5169_s17 + $0x250] sm:$0xff]   ;;  %v4748_v47 = vld [vmem:[%s5169_s17 + $0x388] sm:$0xff]   ;;  %v4753_v50 = vld [vmem:[%s5169_s17 + $0x358] sm:$0xff]  }
 0x989   : > { %4353 = vmatprep.subr.bf16.mxu0 %v4693_v56  ;;  %4375 = vmatprep.subr.bf16.mxu1 %v4694_v16  ;;  %v4718_v12 = vld [vmem:[%s5169_s17 + $0x2d0] sm:$0xff]   ;;  %v4722_v56 = vld [vmem:[%s5169_s17 + $0x2d8] sm:$0xff]  }
 0x98a   : > { %v2311_v24 = vpop.f32.mrb[36].mxu0  ;;  %v2352_v25 = vpop.f32.mrb[36].mxu1  ;;  %v4723_v16 = vld [vmem:[%s5169_s17 + $0x218] sm:$0xff]   ;;  %v4752_v49 = vld [vmem:[%s5169_s17 + $0x390] sm:$0xff]  }
 0x98b   : > { %v5501_v26 = vadd.f32 %v2311_v24, %v1839_v19  ;;  %v5504_v27 = vadd.f32 %v2352_v25, %v5445_v59  ;;  %v5506_v28 = vpop.f32.mrb[37].mxu0  ;;  %v5508_v8 = vpop.f32.mrb[37].mxu1  ;;  %v1815_v59 = vrot.slane %v5449_v61, %v1814_v55  ;;  %v4703_v55 = vld [vmem:[%s5169_s17 + $0x130] sm:$0xff]   ;;  %v4724_v19 = vld [vmem:[%s5169_s17 + $0x298] sm:$0xff]   ;;  %v4729_v24 = vld [vmem:[%s5169_s17 + $0x268] sm:$0xff]  }
 0x98c   : > { %4354 = vmatpush3.bf16.msra.mxu0 %v4695_v20  ;;  %4376 = vmatpush3.bf16.msra.mxu1 %v4696_v21  ;;  %v2315_v29 = vpop.f32.mrb[38].mxu0  ;;  %v2356_v30 = vpop.f32.mrb[38].mxu1  ;;  %v4704_v61 = vld [vmem:[%s5169_s17 + $0x1b0] sm:$0xff]   ;;  %v4725_v20 = vld [vmem:[%s5169_s17 + $0x260] sm:$0xff]   ;;  %v4730_v25 = vld [vmem:[%s5169_s17 + $0x2e8] sm:$0xff]  }
 0x98d   : > { %v2316_v36 = vpop.f32.mrb[39].mxu0  ;;  %v2357_v37 = vpop.f32.mrb[39].mxu1  ;;  %4355 = vmatprep.subr.bf16.mxu0 %v4697_v22  ;;  %4377 = vmatprep.subr.bf16.mxu1 %v4698_v23  ;;  %v2189_v42 = vadd.f32 %v5476_v35, %v1815_v59  ;;  %v4710_v35 = vld [vmem:[%s5169_s17 + $0x2c0] sm:$0xff]   ;;  %v4731_v29 = vld [vmem:[%s5169_s17 + $0x228] sm:$0xff]   ;;  %v1823_v30 = vrot.slane %v5440_v58, %v5274_v7  ;;  %v1843_v59 = vrot.slane %v5440_v58, %v1810_v17 }
 0x98e   : > { %v4726_v21 = vld [vmem:[%s5169_s17 + $0x2e0] sm:$0xff]   ;;  %v1851_v36 = vrot.slane %v5440_v58, %v1818_v18  ;;  %v4735_v37 = vld [vmem:[%s5169_s17 + $0x230] sm:$0xff]   ;;  %v4739_v58 = vld [vmem:[%s5169_s17 + $0x238] sm:$0xff]  }
 0x98f   : > { %v2365_v48 = vmax.f32 %v2189_v42, 0.0  ;;  %v4727_v22 = vld [vmem:[%s5169_s17 + $0x220] sm:$0xff]   ;;  %v2230_v7 = vadd.f32 %v5487_v1, %v1823_v30  ;;  %v2314_v17 = vadd.f32 %v5506_v28, %v1843_v59  ;;  %v4740_v1 = vld [vmem:[%s5169_s17 + $0x2b8] sm:$0xff]  }
 0x990   : > { %4356 = vmatpush3.bf16.msra.mxu0 %v4699_v31  ;;  %4378 = vmatpush3.bf16.msra.mxu1 %v4700_v32  ;;  %v4728_v23 = vld [vmem:[%s5169_s17 + $0x2a0] sm:$0xff]   ;;  %v4732_v31 = vld [vmem:[%s5169_s17 + $0x2a8] sm:$0xff]   ;;  %v4733_v32 = vld [vmem:[%s5169_s17 + $0x270] sm:$0xff]   ;;  %v2355_v6 = vadd.f32 %v5508_v8, %v1851_v36 }
 0x991   : > { %4357 = vmatprep.subr.bf16.mxu0 %v4701_v38  ;;  %4379 = vmatprep.subr.bf16.mxu1 %v4702_v39  ;;  %v2381_v53 = vpack.c.bf16 %v2365_v48, %v2365_v48  ;;  %v4736_v38 = vld [vmem:[%s5169_s17 + $0x2b0] sm:$0xff]   ;;  %v4737_v39 = vld [vmem:[%s5169_s17 + $0x278] sm:$0xff]   ;;  %v2367_v18 = vmax.f32 %v2230_v7, 0.0  ;;  %v2372_v10 = vmax.f32 %v2314_v17, 0.0  ;;  %v4743_v28 = vld [vmem:[%s5169_s17 + $0x300] sm:$0xff]  }
 0x992   : > { %v2374_v42 = vmax.f32 %v2355_v6, 0.0  ;;  %v4749_v48 = vld [vmem:[%s5169_s17 + $0x350] sm:$0xff]   ;;  %v4132_v30 = vld [vmem:[%s913_s30] ss:$0 sm:$0xff]  ;;  %s5794_s30 = sld [smem:[#allocation6_spill]] }
 0x993   : > { %v2383_v8 = vpack.c.bf16 %v2367_v18, %v2367_v18  ;;  %v2388_v45 = vpack.c.bf16 %v2372_v10, %v2372_v10 }
 0x994   : > { %4358 = vmatpush3.bf16.msra.mxu0 %v4703_v55  ;;  %4380 = vmatpush3.bf16.msra.mxu1 %v4704_v61  ;;  %v2369_v55 = vmax.f32 %v5489_v60, 0.0  ;;  %v4742_v61 = vld [vmem:[%s5169_s17 + $0x3c0] sm:$0xff]   ;;  %v4746_v60 = vld [vmem:[%s5169_s17 + $0x3c8] sm:$0xff]  }
 0x995   : > { %4359 = vmatprep.subr.bf16.mxu0 %v4705_v43  ;;  %4381 = vmatprep.subr.bf16.mxu1 %v4706_v62  ;;  %v4744_v43 = vld [vmem:[%s5169_s17 + $0x380] sm:$0xff]  }
 0x996   : > { %v2385_v62 = vpack.c.bf16 %v2369_v55, %v2369_v55 }
 0x998   : > { %4360 = vmatpush3.bf16.msra.mxu0 %v4707_v63  ;;  %4382 = vmatpush3.bf16.msra.mxu1 %v4708_v46  ;;  %v2390_v63 = vpack.c.bf16 %v2374_v42, %v2374_v42  ;;  %v4747_v46 = vld [vmem:[%s5169_s17 + $0x308] sm:$0xff]   ;;  %s5799_s26 = sand.u32 1, %s5794_s30  }
 0x999   : > { %4389 = vmatprep.subr.bf16.mxu0 %v4709_v34  ;;  %4411 = vmatprep.subr.bf16.mxu1 %v4710_v35  ;;  %v4750_v34 = vld [vmem:[%s5169_s17 + $0x3d0] sm:$0xff]   ;;  %s3786_s0 = scalar_lea.sflag [#allocation3], %s5799_s26 }
 0x99a   : > { %v4751_v35 = vld [vmem:[%s5169_s17 + $0x310] sm:$0xff]  }
 0x99b   : > { %3535 = vmatmul.mubr.bf16.vlgmr.msra.gmra.mrb[44].mxu0 %v2379_v52  ;;  %3575 = vmatmul.mubr.bf16.vlgmr.msra.gmra.mrb[44].mxu1 %v2381_v53  ;;  %v4755_v52 = vld [vmem:[%s5169_s17 + $0x318] sm:$0xff]  }
 0x99c   : > { %4390 = vmatpush3.bf16.msra.mxu0 %v4711_v51  ;;  %3614 = vmatprep.mubr.bf16.mxu0 %v2384_v0  ;;  %v4754_v51 = vld [vmem:[%s5169_s17 + $0x3d8] sm:$0xff]   ;;  %v4758_v0 = vld [vmem:[%s5169_s17 + $0x3e0] sm:$0xff]  }
 0x99d   : > { %4412 = vmatpush3.bf16.msra.mxu1 %v4712_v54  ;;  %3654 = vmatprep.mubr.bf16.mxu1 %v2386_v4  ;;  %v4756_v53 = vld [vmem:[%s5169_s17 + $0x398] sm:$0xff]   ;;  %v4757_v54 = vld [vmem:[%s5169_s17 + $0x360] sm:$0xff]   ;;  %v4761_v4 = vld [vmem:[%s5169_s17 + $0x368] sm:$0xff]  }
 0x99e   : > { %4391 = vmatprep.subr.bf16.mxu0 %v4713_v2  ;;  %4413 = vmatprep.subr.bf16.mxu1 %v4714_v3  ;;  %v4759_v2 = vld [vmem:[%s5169_s17 + $0x320] sm:$0xff]  }
 0x99f   : > { %v4760_v3 = vld [vmem:[%s5169_s17 + $0x3a0] sm:$0xff]  }
 0x9a0   : > { %4392 = vmatpush3.bf16.msra.mxu0 %v4715_v5  ;;  %v4762_v5 = vld [vmem:[%s5169_s17 + $0x3e8] sm:$0xff]  }
 0x9a1   : > { %4414 = vmatpush3.bf16.msra.mxu1 %v4716_v9  ;;  %4393 = vmatprep.subr.bf16.mxu0 %v4717_v11  ;;  %v4763_v9 = vld [vmem:[%s5169_s17 + $0x328] sm:$0xff]  }
 0x9a2   : > { %4415 = vmatprep.subr.bf16.mxu1 %v4718_v12  ;;  %v4764_v11 = vld [vmem:[%s5169_s17 + $0x3a8] sm:$0xff]   ;;  %v4765_v12 = vld [vmem:[%s5169_s17 + $0x370] sm:$0xff]  }
 0x9a4   : > { %4394 = vmatpush3.bf16.msra.mxu0 %v4719_v13  ;;  %v4766_v13 = vld [vmem:[%s5169_s17 + $0x3f0] sm:$0xff]  }
 0x9a5   : > { %4416 = vmatpush3.bf16.msra.mxu1 %v4720_v14  ;;  %4395 = vmatprep.subr.bf16.mxu0 %v4721_v15  ;;  %v4767_v14 = vld [vmem:[%s5169_s17 + $0x330] sm:$0xff]  }
 0x9a6   : > { %4417 = vmatprep.subr.bf16.mxu1 %v4722_v56  ;;  %v4768_v15 = vld [vmem:[%s5169_s17 + $0x3b0] sm:$0xff]   ;;  %v4769_v56 = vld [vmem:[%s5169_s17 + $0x378] sm:$0xff]  }
 0x9a8   : > { %4396 = vmatpush3.bf16.msra.mxu0 %v4723_v16  ;;  %v4770_v16 = vld [vmem:[%s5169_s17 + $0x3f8] sm:$0xff]  }
 0x9a9   : > { %4418 = vmatpush3.bf16.msra.mxu1 %v4724_v19  ;;  %4397 = vmatprep.subr.bf16.mxu0 %v4725_v20  ;;  %v4771_v19 = vld [vmem:[%s5169_s17 + $0x338] sm:$0xff]   ;;  %v2371_v20 = vmax.f32 %v5501_v26, 0.0 }
 0x9aa   : > { %4419 = vmatprep.subr.bf16.mxu1 %v4726_v21  ;;  %v4772_v21 = vld [vmem:[%s5169_s17 + $0x3b8] sm:$0xff]   ;;  %s5793_s17 = sld [smem:[#allocation9_spill]] }
 0x9ac   : > { %4398 = vmatpush3.bf16.msra.mxu0 %v4727_v22  ;;  %v2373_v22 = vmax.f32 %v5504_v27, 0.0 }
 0x9ad   : > { %4420 = vmatpush3.bf16.msra.mxu1 %v4728_v23  ;;  %4399 = vmatprep.subr.bf16.mxu0 %v4729_v24  ;;  %v2387_v23 = vpack.c.bf16 %v2371_v20, %v2371_v20 }
 0x9ae   : > { %4421 = vmatprep.subr.bf16.mxu1 %v4730_v25  ;;  %v2389_v24 = vpack.c.bf16 %v2373_v22, %v2373_v22 }
 0x9b0   : > { %4400 = vmatpush3.bf16.msra.mxu0 %v4731_v29  ;;  %s4264_s18 = sshll.u32 %s5793_s17, 7 }
 0x9b1   : > { %4422 = vmatpush3.bf16.msra.mxu1 %v4732_v31  ;;  %4401 = vmatprep.subr.bf16.mxu0 %v4733_v32  ;;  %s5630_s27 = scalar_lea.hbm %s5798_s28, %s4264_s18 }
 0x9b2   : > { %4423 = vmatprep.subr.bf16.mxu1 %v4734_v33 }
 0x9b4   : > { %4402 = vmatpush3.bf16.msra.mxu0 %v4735_v37 }
 0x9b5   : > { %4424 = vmatpush3.bf16.msra.mxu1 %v4736_v38  ;;  %4403 = vmatprep.subr.bf16.mxu0 %v4737_v39 }
 0x9b6   : > { %4425 = vmatprep.subr.bf16.mxu1 %v4738_v40 }
 0x9b8   : > { %4404 = vmatpush3.bf16.msra.mxu0 %v4739_v58 }
 0x9b9   : > { %4426 = vmatpush3.bf16.msra.mxu1 %v4740_v1  ;;  %4433 = vmatprep.subr.bf16.mxu0 %v4741_v41 }
 0x9ba   : > { %4455 = vmatprep.subr.bf16.mxu1 %v4742_v61 }
 0x9bb   : > { %3615 = vmatmul.mubr.bf16.vlgmr.msra.gmra.mrb[48].mxu0 %v2383_v8 }
 0x9bc   : > { %3655 = vmatmul.mubr.bf16.vlgmr.msra.gmra.mrb[48].mxu1 %v2385_v62  ;;  %4434 = vmatpush3.bf16.msra.mxu0 %v4743_v28 }
 0x9bd   : > { %3694 = vmatprep.mubr.bf16.mxu0 %v2388_v45  ;;  %4456 = vmatpush3.bf16.msra.mxu1 %v4744_v43 }
 0x9be   : > { %3734 = vmatprep.mubr.bf16.mxu1 %v2390_v63  ;;  %4435 = vmatprep.subr.bf16.mxu0 %v4745_v44 }
 0x9bf   : > { %4457 = vmatprep.subr.bf16.mxu1 %v4746_v60 }
 0x9c0   : > { %4436 = vmatpush3.bf16.msra.mxu0 %v4747_v46 }
 0x9c1   : > { %4458 = vmatpush3.bf16.msra.mxu1 %v4748_v47  ;;  %4437 = vmatprep.subr.bf16.mxu0 %v4749_v48 }
 0x9c2   : > { %4459 = vmatprep.subr.bf16.mxu1 %v4750_v34 }
 0x9c4   : > { %4438 = vmatpush3.bf16.msra.mxu0 %v4751_v35 }
 0x9c5   : > { %4460 = vmatpush3.bf16.msra.mxu1 %v4752_v49  ;;  %4439 = vmatprep.subr.bf16.mxu0 %v4753_v50 }
 0x9c6   : > { %4461 = vmatprep.subr.bf16.mxu1 %v4754_v51 }
 0x9c8   : > { %4440 = vmatpush3.bf16.msra.mxu0 %v4755_v52 }
 0x9c9   : > { %4462 = vmatpush3.bf16.msra.mxu1 %v4756_v53  ;;  %4441 = vmatprep.subr.bf16.mxu0 %v4757_v54 }
 0x9ca   : > { %4463 = vmatprep.subr.bf16.mxu1 %v4758_v0 }
 0x9cc   : > { %4442 = vmatpush3.bf16.msra.mxu0 %v4759_v2 }
 0x9cd   : > { %4464 = vmatpush3.bf16.msra.mxu1 %v4760_v3  ;;  %4443 = vmatprep.subr.bf16.mxu0 %v4761_v4 }
 0x9ce   : > { %4465 = vmatprep.subr.bf16.mxu1 %v4762_v5 }
 0x9d0   : > { %4444 = vmatpush3.bf16.msra.mxu0 %v4763_v9 }
 0x9d1   : > { %4466 = vmatpush3.bf16.msra.mxu1 %v4764_v11  ;;  %4445 = vmatprep.subr.bf16.mxu0 %v4765_v12 }
 0x9d2   : > { %4467 = vmatprep.subr.bf16.mxu1 %v4766_v13 }
 0x9d4   : > { %4446 = vmatpush3.bf16.msra.mxu0 %v4767_v14 }
 0x9d5   : > { %4468 = vmatpush3.bf16.msra.mxu1 %v4768_v15  ;;  %4447 = vmatprep.subr.bf16.mxu0 %v4769_v56 }
 0x9d6   : > { %4469 = vmatprep.subr.bf16.mxu1 %v4770_v16 }
 0x9d8   : > { %4448 = vmatpush3.bf16.msra.mxu0 %v4771_v19 }
 0x9d9   : > { %4470 = vmatpush3.bf16.msra.mxu1 %v4772_v21 }
 0x9db   : > { %3695 = vmatmul.mubr.bf16.vlgmr.msra.gmra.mrb[52].mxu0 %v2387_v23 }
 0x9dc   : > { %3735 = vmatmul.mubr.bf16.vlgmr.msra.gmra.mrb[52].mxu1 %v2389_v24 }
 0xa4e   : > { %v4317_v25 = vpop.f32.mrb[40].mxu0  ;;  %v4339_v29 = vpop.f32.mrb[40].mxu1 }
 0xa4f   : > { %v4318_v26 = vpop.f32.mrb[41].mxu0  ;;  %v4340_v31 = vpop.f32.mrb[41].mxu1 }
 0xa50   : > { %v4319_v32 = vadd.f32 %v4318_v26, %v4317_v25  ;;  %v4341_v33 = vadd.f32 %v4340_v31, %v4339_v29  ;;  %v4320_v59 = vpop.f32.mrb[42].mxu0  ;;  %v4342_v27 = vpop.f32.mrb[42].mxu1  ;;  %v4261_v25 = vld [vmem:[%s5795_s14] ss:$0 sm:$0xff] }
 0xa51   : > { %v4321_v36 = vpop.f32.mrb[43].mxu0  ;;  %v4343_v37 = vpop.f32.mrb[43].mxu1  ;;  %v4262_v31 = vld [vmem:[%s5797_s23] ss:$0 sm:$0xff] }
 0xa52   : > { %v3457_v7 = vadd.f32 %v4319_v32, %v4132_v30  ;;  %v3781_v30 = vstv %s3780_s12 }
 0xa53   : > { %vm3782_vm15 = vcmp.eq.s32.totalorder %v3781_v30, 1 }
 0xa54   : > { %v3497_v38 = vadd.f32 %v4341_v33, %v3457_v7 }
 0xa6e   : > { %v4361_v39 = vpop.f32.mrb[44].mxu0  ;;  %v4383_v40 = vpop.f32.mrb[44].mxu1 }
 0xa6f   : > { %v4362_v17 = vpop.f32.mrb[45].mxu0  ;;  %v4384_v6 = vpop.f32.mrb[45].mxu1 }
 0xa70   : > { %v4363_v58 = vadd.f32 %v4362_v17, %v4361_v39  ;;  %v4385_v18 = vadd.f32 %v4384_v6, %v4383_v40  ;;  %v4364_v1 = vpop.f32.mrb[46].mxu0  ;;  %v4386_v41 = vpop.f32.mrb[46].mxu1 }
 0xa71   : > { %v4365_v55 = vpop.f32.mrb[47].mxu0  ;;  %v4387_v61 = vpop.f32.mrb[47].mxu1 }
 0xa72   : > { %v3537_v10 = vadd.f32 %v4363_v58, %v3497_v38 }
 0xa74   : > { %v3577_v42 = vadd.f32 %v4385_v18, %v3537_v10 }
 0xa8e   : > { %v4405_v28 = vpop.f32.mrb[48].mxu0 }
 0xa8f   : > { %v4427_v8 = vpop.f32.mrb[48].mxu1  ;;  %v4406_v43 = vpop.f32.mrb[49].mxu0 }
 0xa90   : > { %v4407_v62 = vadd.f32 %v4406_v43, %v4405_v28  ;;  %v4428_v44 = vpop.f32.mrb[49].mxu1  ;;  %v4408_v45 = vpop.f32.mrb[50].mxu0 }
 0xa91   : > { %v4429_v60 = vadd.f32 %v4428_v44, %v4427_v8  ;;  %v4430_v63 = vpop.f32.mrb[50].mxu1  ;;  %v4409_v46 = vpop.f32.mrb[51].mxu0 }
 0xa92   : > { %v3617_v47 = vadd.f32 %v4407_v62, %v3577_v42  ;;  %v4431_v48 = vpop.f32.mrb[51].mxu1 }
 0xa94   : > { %v3657_v34 = vadd.f32 %v4429_v60, %v3617_v47 }
 0xaae   : > { %v4449_v35 = vpop.f32.mrb[52].mxu0 }
 0xaaf   : > { %v4471_v49 = vpop.f32.mrb[52].mxu1  ;;  %v4450_v50 = vpop.f32.mrb[53].mxu0 }
 0xab0   : > { %v4451_v51 = vadd.f32 %v4450_v50, %v4449_v35  ;;  %v4472_v52 = vpop.f32.mrb[53].mxu1  ;;  %v4452_v53 = vpop.f32.mrb[54].mxu0 }
 0xab1   : > { %v4473_v54 = vadd.f32 %v4472_v52, %v4471_v49  ;;  %v4474_v0 = vpop.f32.mrb[54].mxu1  ;;  %v4453_v2 = vpop.f32.mrb[55].mxu0 }
 0xab2   : > { %v3697_v3 = vadd.f32 %v4451_v51, %v3657_v34  ;;  %v4475_v4 = vpop.f32.mrb[55].mxu1 }
 0xab4   : > { %v3737_v5 = vadd.f32 %v4473_v54, %v3697_v3 }
 0xab6   : > { %v3742_v9 = vadd.f32 %v3737_v5, %v5332_v57 }
 0xab8   : > { %v3745_v11 = vsel %vm927_vm1, %v3742_v9, 0.0 }
 0xab9   : > { %3746 = vadd.xlane.f32.xlu0 %v3745_v11 }
 0xb46   : > { %v3747_v12 = vpop.xlane.xlu0 %3746 }
 0xb47   : > { %v3748_v13 = vmul.f32 0.03125, %v3747_v12 }
 0xb49   : > { %v3749_v14 = vsub.f32 %v3742_v9, %v3748_v13 }
 0xb4b   : > { %v3750_v15 = vmul.f32 %v3749_v14, %v3749_v14  ;;  %v3770_v29 = vmul.f32 %v4261_v25, %v3749_v14 }
 0xb4d   : > { %v3751_v56 = vsel %vm927_vm1, %v3750_v15, 0.0 }
 0xb4e   : > { %3752 = vadd.xlane.f32.xlu1 %v3751_v56 }
 0xbdb   : > { %v3753_v16 = vpop.xlane.xlu1 %3752 }
 0xbdc   : > { %v3754_v19 = vmul.f32 0.032258064, %v3753_v16 }
 0xbde   : > { %4797 = vrsqrt.f32 %v3754_v19  ;;  %vm3757_vm13 = vcmp.eq.f32.partialorder %v3754_v19, inf  ;;  %v3760_v57 = vand.u32 2147483648, %v3754_v19  ;;  %vm3759_vm14 = vcmp.eq.f32.partialorder %v3754_v19, 0.0 }
 0xbe8   : > { %v4798_v20 = vpop.eup %4797 }
 0xbe9   : > { %v3756_v21 = vmul.f32 %v4798_v20, %v3754_v19 }
 0xbeb   : > { %v3758_v22 = vsel %vm3757_vm13, %v3754_v19, %v3756_v21 }
 0xbec   : > { %v3761_v23 = vsel %vm3759_vm14, %v3760_v57, %v3758_v22 }
 0xbed   : > { %v3762_v24 = vadd.f32 1e-06, %v3761_v23 }
 0xbef   : > { %4799 = vrcp.f32 %v3762_v24 }
 0xbf9   : > { %v4800_v26 = vpop.eup %4799 }
 0xbfa   : > { %v3771_v32 = vmul.f32 %v4800_v26, %v3770_v29 }
 0xbfc   : > { %v3778_v33 = vadd.f32 %v4262_v31, %v3771_v32 }
 0xbfe   : > { %v3783_v59 = vsel %vm3782_vm15, %v3778_v33, %v3742_v9 }
 0xbff   : > { %3784 = vst.msk [vmem:[%s5175_s6] sm:$0xff] %vm927_vm1, %v3783_v59 }
 0xc00   : > { %4815 = shalt.err (!%p4812_p10)
}
 0xc01   : > { %s4816_s6 = scalar_lea.hbm %s5630_s27, 128  ;;  %s4820_s4 = scalar_lea.hbm %s5798_s28, 256 }
 0xc02   : > { %p4817_p11 = scmp.ne.s32.totalorder %s5630_s27, %s4816_s6  ;;  %p4821_p0 = scmp.lt.u32.totalorder %s5630_s27, %s5798_s28 }
 0xc03   : > { %p4822_p1 = scmp.lt.u32.totalorder %s4820_s4, %s4816_s6  ;;  %p4824_p4 = scmp.lt.u32.totalorder %s4816_s6, %s5630_s27 }
 0xc04   : > { %p4818_p12 = pnand %p4817_p11, %p5062_p3 }
 0xc05   : > { %p4823_p2 = por %p4822_p1, %p4821_p0 }
 0xc06   : > { %p4819_p13 = pneg %p4818_p12 }
 0xc07   : > { %p4825_p5 = por %p4824_p4, %p4823_p2 }
 0xc09   : > { %p4826_p6 = pnand %p4825_p5, %p4819_p13 }
 0xc0b   : > { %4829 = shalt.err (!%p4826_p6)
}
 0xc0c   : > { %4557 = dma.vmem_to_hbm [thread:$0]  (%p5062_p3), %s5632_s21, 128, %s5630_s27, %s3786_s0  }
 0xc0d PF: > { %s5800_s30 = sld [smem:[#allocation12_spill]]  ;;  %s5801_s12 = sld [smem:[#allocation5_spill]] }
 0xc13   : > { %p4563_p7 = scmp.ge.s32.totalorder %s5800_s30, 2  ;;  %s3811_s10 = sand.u32 1, %s5801_s12  }
 0xc14   : > { %s3812_s14 = scalar_lea.sflag [#allocation3], %s3811_s10 }
 0xc15   : > { %p4560_p8 = pnand %p4563_p7, %p5072_p9 }
 0xc17   : > { %4863 = dma.done.wait (!%p4560_p8), %s3812_s14, 128  }
 0xc18   : > { %4865 = vsyncadd (!%p4560_p8), %s3812_s14, 4294967168  ;;  %s33_s26 = sadd.s32 1, %s5800_s30   ;;  %s5803_s1 = sld [smem:[#allocation6_spill]] }
 0xc19   : > { %p30_p10 = scmp.ge.s32.totalorder %s33_s26, 6   ;;  %s5804_s22 = sld [smem:[#allocation7_spill]] }
 0xc1a   : > { %s5805_s23 = sld [smem:[#allocation17_spill]]  ;;  %s5806_s24 = sld [smem:[#allocation10_spill]] }
 0xc1b   : > { %s5807_s2 = sld [smem:[#allocation11_spill]]  ;;  %s5808_s25 = sld [smem:[#allocation13_spill]] }
 0xc1c   : > { %s5809_s3 = sld [smem:[#allocation15_spill]]  ;;  %32 = sbr.rel (!%p30_p10) target bundleno = 23 (0x17), region = 190 }
 0xc23   :  { %3817 = vsyncpa [#allocation3], 1 }
 0xc24   :  { %3819 = vsyncpa [#allocation3 + $0x1], 1 }

</bundles_post_ra>
